<compile_context>
chip_gen: v5e
topology: v5e:2x2
jax: 0.10.0
libtpu: 0.0.40
codegen_flags: <defaults>
</compile_context>

<pallas_src>
import functools
import math

import jax
import jax.numpy as jnp
from jax.experimental import pallas as pl
from jax.experimental.pallas import tpu as pltpu


_PROJ_TILE = 256                    # rows per projection tile (v7x/v5e-safe with bf16 activations)
_VMEM_LIMIT = 32 * 1024 * 1024      # explicit scoped-VMEM budget, safe on v5e/v6e/v7x


# ----------------------------------------------------------------------------
# Kernel 1a: input projection for layer 0:  xg = x @ W_both + bias_both
#   W_both packs [W_ih_fwd^T | W_ih_bwd^T] -> (D, 8H); output stored bf16.
# ----------------------------------------------------------------------------
def _proj_single_kernel(x_ref, w_ref, b_ref, o_ref):
    acc = jnp.dot(x_ref[...], w_ref[...], preferred_element_type=jnp.float32)
    o_ref[...] = (acc + b_ref[...]).astype(o_ref.dtype)


def project_single(x2d, w_t, bias):
    """x2d: (N, D) bf16, w_t: (D, 8H) bf16, bias: (1, 8H) f32 -> (N, 8H) bf16."""
    N, D = x2d.shape
    G = w_t.shape[1]
    tile = min(N, _PROJ_TILE)
    cost = pl.CostEstimate(
        flops=2 * N * D * G, transcendentals=0,
        bytes_accessed=N * D * 2 + D * G * 2 + G * 4 + N * G * 2)
    return pl.pallas_call(
        _proj_single_kernel,
        out_shape=jax.ShapeDtypeStruct((N, G), jnp.bfloat16),
        grid=(pl.cdiv(N, tile),),
        in_specs=[
            pl.BlockSpec((tile, D), lambda i: (i, 0)),
            pl.BlockSpec((D, G), lambda i: (0, 0)),
            pl.BlockSpec((1, G), lambda i: (0, 0)),
        ],
        out_specs=pl.BlockSpec((tile, G), lambda i: (i, 0)),
        compiler_params=pltpu.CompilerParams(
            dimension_semantics=("parallel",),
            vmem_limit_bytes=_VMEM_LIMIT),
        cost_estimate=cost,
    )(x2d, w_t, bias)


# ----------------------------------------------------------------------------
# Kernel 1b: input projection for layers >= 1, reading the previous layer's
# direction-stacked output (2, N, H) directly (no HBM concat ever built):
#   the fwd/bwd rows are packed side-by-side into a (tile, 2H) VMEM scratch and
#   projected with a SINGLE K=2H dot against the full (2H, 8H) weight.
# ----------------------------------------------------------------------------
def _proj_dual_kernel(hf_ref, hb_ref, w_ref, b_ref, o_ref, xcat_ref):
    H = hf_ref.shape[2]
    xcat_ref[:, :H] = hf_ref[0]
    xcat_ref[:, H:] = hb_ref[0]
    acc = jnp.dot(xcat_ref[...], w_ref[...], preferred_element_type=jnp.float32)
    o_ref[...] = (acc + b_ref[...]).astype(o_ref.dtype)


def project_dual(h2, w_t, bias):
    """h2: (2, N, H) bf16, w_t: (2H, 8H) bf16, bias: (1, 8H) f32 -> (N, 8H) bf16."""
    _, N, H = h2.shape
    G = w_t.shape[1]
    tile = min(N, _PROJ_TILE)
    cost = pl.CostEstimate(
        flops=2 * N * (2 * H) * G, transcendentals=0,
        bytes_accessed=2 * N * H * 2 + 2 * H * G * 2 + G * 4 + N * G * 2)
    return pl.pallas_call(
        _proj_dual_kernel,
        out_shape=jax.ShapeDtypeStruct((N, G), jnp.bfloat16),
        grid=(pl.cdiv(N, tile),),
        in_specs=[
            pl.BlockSpec((1, tile, H), lambda i: (0, i, 0)),   # forward hidden rows
            pl.BlockSpec((1, tile, H), lambda i: (1, i, 0)),   # backward hidden rows
            pl.BlockSpec((2 * H, G), lambda i: (0, 0)),
            pl.BlockSpec((1, G), lambda i: (0, 0)),
        ],
        out_specs=pl.BlockSpec((tile, G), lambda i: (i, 0)),
        scratch_shapes=[pltpu.VMEM((tile, 2 * H), jnp.bfloat16)],
        compiler_params=pltpu.CompilerParams(
            dimension_semantics=("parallel",),
            vmem_limit_bytes=_VMEM_LIMIT),
        cost_estimate=cost,
    )(h2, h2, w_t, bias)


# ----------------------------------------------------------------------------
# Kernel 2: bidirectional LSTM recurrence, grid = (direction, time-chunk).
# Direction axis is leading + "parallel" (independent states, megacore-
# shardable on v7x); the time-chunk axis is "arbitrary".  Each grid step
# processes `chunk` timesteps with an inner fori_loop; (h, c) are carried in
# vregs within the chunk and persisted across chunks in VMEM scratch.  The
# backward direction reads/writes time block (n_chunks-1-tc) and iterates the
# chunk in reverse - all through the index_map / loop index, no data reversal.
# PyTorch LSTM gate order: i, f, g, o.
# ----------------------------------------------------------------------------
def _bilstm_recurrence_kernel(xg_ref, whh_ref, out_ref, h_st, c_st, *,
                              hidden, chunk, seq_len, n_chunks, unroll):
    d = pl.program_id(0)        # 0 = forward, 1 = backward (time-reversed)
    tc = pl.program_id(1)       # time-chunk index in processing order

    @pl.when(tc == 0)
    def _():                    # per-direction (and per-core on v7x) state reset
        h_st[...] = jnp.zeros_like(h_st)
        c_st[...] = jnp.zeros_like(c_st)

    H = hidden
    # time block this chunk covers (same formula the index_maps use)
    blk = tc + d * (n_chunks - 1 - 2 * tc)
    base = blk * chunk
    whh = whh_ref[0]            # (H, 4H) bf16

    def step(s, carry):
        h_prev, c_prev = carry
        # local timestep: forward walks 0..chunk-1, backward walks chunk-1..0
        t_loc = s + d * (chunk - 1 - 2 * s)
        valid = base + t_loc < seq_len          # partial last time-chunk guard

        # gates: (B, 4H) = x-projection at this step + h_{t-1} @ W_hh^T
        gates = xg_ref[t_loc].astype(jnp.float32) + jnp.dot(
            h_prev.astype(jnp.bfloat16), whh, preferred_element_type=jnp.float32)
        i_g = jax.nn.sigmoid(gates[:, 0 * H:1 * H])
        f_g = jax.nn.sigmoid(gates[:, 1 * H:2 * H])
        g_g = jnp.tanh(gates[:, 2 * H:3 * H])
        o_g = jax.nn.sigmoid(gates[:, 3 * H:4 * H])

        c = f_g * c_prev + i_g * g_g
        h = o_g * jnp.tanh(c)

        # out-of-range rows of the block are masked on writeback by Pallas
        out_ref[0, t_loc] = h.astype(out_ref.dtype)

        # never let padded timesteps corrupt the carried state
        h = jnp.where(valid, h, h_prev)
        c = jnp.where(valid, c, c_prev)
        return h, c

    h_fin, c_fin = jax.lax.fori_loop(0, chunk, step, (h_st[...], c_st[...]),
                                     unroll=unroll)
    h_st[...] = h_fin
    c_st[...] = c_fin


def _pick_time_chunk(T, B, H):
    """Timesteps per chunk: keep the (TC, B, 4H) bf16 xg block around <=2 MiB,
    clamp to [8, 128] and round to a multiple of 8 (then cap at T)."""
    bytes_per_t = max(1, B * 4 * H * 2)
    tc = (2 * 1024 * 1024) // bytes_per_t
    tc = max(8, min(128, tc))
    tc = (tc // 8) * 8
    return min(T, tc)


def bilstm_recurrence(xg, whh_both, hidden):
    """xg: (T, B, 8H) bf16 (cols [0:4H]=fwd gates, [4H:8H]=bwd gates),
    whh_both: (2, H, 4H) bf16 -> (2, T, B, H) bf16 (dir, time, batch, hidden)."""
    T, B, G2 = xg.shape
    H = hidden
    G = 4 * H
    assert G2 == 2 * G
    # Column-block read of xg needs the 4H gate width lane-aligned.
    # TODO(synk): pad the gate dim for hidden sizes that are not multiples of 32.
    assert G % 128 == 0, "hidden_size must be a multiple of 32"

    chunk = _pick_time_chunk(T, B, H)
    n_chunks = pl.cdiv(T, chunk)
    unroll = 8 if chunk % 8 == 0 else 1

    def time_blk(d, c):
        return c + d * (n_chunks - 1 - 2 * c)   # d=0: c ; d=1: n_chunks-1-c

    kernel = functools.partial(
        _bilstm_recurrence_kernel, hidden=H, chunk=chunk, seq_len=T,
        n_chunks=n_chunks, unroll=unroll)

    cost = pl.CostEstimate(
        flops=2 * 2 * T * B * H * G,            # h @ W_hh^T, both directions
        transcendentals=5 * 2 * T * B * H,      # 3 sigmoid + 2 tanh per element
        bytes_accessed=T * B * 2 * G * 2 + 2 * T * B * H * 2 + 2 * H * G * 2)

    return pl.pallas_call(
        kernel,
        out_shape=jax.ShapeDtypeStruct((2, T, B, H), jnp.bfloat16),
        grid=(2, n_chunks),
        in_specs=[
            pl.BlockSpec((chunk, B, G), lambda d, c: (time_blk(d, c), 0, d)),
            pl.BlockSpec((1, H, G), lambda d, c: (d, 0, 0)),
        ],
        out_specs=pl.BlockSpec((1, chunk, B, H),
                               lambda d, c: (d, time_blk(d, c), 0, 0)),
        scratch_shapes=[
            pltpu.VMEM((B, H), jnp.float32),    # h carry across chunks
            pltpu.VMEM((B, H), jnp.float32),    # c carry across chunks
        ],
        compiler_params=pltpu.CompilerParams(
            dimension_semantics=("parallel", "arbitrary"),
            vmem_limit_bytes=_VMEM_LIMIT),
        cost_estimate=cost,
    )(xg, whh_both)


# ----------------------------------------------------------------------------
# Parameter construction (deterministic, PyTorch-style uniform(-1/sqrt(H), ...))
# Weights stored bf16 (MXU operands); biases/state kept f32.
# ----------------------------------------------------------------------------
def init_params(key, input_size, hidden_size, num_layers):
    params = []
    H = hidden_size
    k = 1.0 / math.sqrt(H)
    d_in = input_size
    for _layer in range(num_layers):
        wih_t_dirs, whh_t_dirs, bias_dirs = [], [], []
        for _direction in range(2):  # forward, backward
            key, k1, k2, k3, k4 = jax.random.split(key, 5)
            w_ih = jax.random.uniform(k1, (4 * H, d_in), minval=-k, maxval=k,
                                      dtype=jnp.float32)
            w_hh = jax.random.uniform(k2, (4 * H, H), minval=-k, maxval=k,
                                      dtype=jnp.float32)
            b_ih = jax.random.uniform(k3, (4 * H,), minval=-k, maxval=k,
                                      dtype=jnp.float32)
            b_hh = jax.random.uniform(k4, (4 * H,), minval=-k, maxval=k,
                                      dtype=jnp.float32)
            wih_t_dirs.append(w_ih.T)            # (d_in, 4H)
            whh_t_dirs.append(w_hh.T)            # (H, 4H)
            bias_dirs.append(b_ih + b_hh)
        params.append({
            "w_ih_t": jnp.concatenate(wih_t_dirs, axis=1).astype(jnp.bfloat16),  # (d_in, 8H)
            "w_hh_t": jnp.stack(whh_t_dirs, axis=0).astype(jnp.bfloat16),        # (2, H, 4H)
            "bias": jnp.concatenate(bias_dirs)[None, :],                         # (1, 8H) f32
        })
        d_in = 2 * H
    return params


# ----------------------------------------------------------------------------
# Full StackedBRNN forward (unpadded path; mask accepted but ignored, exactly
# what the PyTorch module does when x_mask.sum() == 0).
# ----------------------------------------------------------------------------
def stacked_brnn_forward(x, x_mask, params, hidden_size, num_layers):
    # x: (B, L, D_in) ; x_mask: (B, L) with 1 for padding, 0 for true tokens.
    del x_mask  # unpadded path: mask sum == 0
    B, L, D = x.shape
    H = hidden_size
    T = L

    # Pad batch to a multiple of 8 so every (B, H) VPU/EUP op and every store is
    # sublane-dense; padded rows are discarded at the end.
    Bp = ((B + 7) // 8) * 8
    if Bp != B:
        x = jnp.pad(x, ((0, Bp - B), (0, 0), (0, 0)))

    xt = jnp.transpose(x, (1, 0, 2)).astype(jnp.bfloat16)     # (T, Bp, D), time-major

    layer_outputs = []      # each: (2, T, Bp, H) bf16
    prev = None
    for layer in range(num_layers):
        p = params[layer]
        if layer == 0:
            xg = project_single(xt.reshape(T * Bp, D), p["w_ih_t"], p["bias"])
        else:
            xg = project_dual(prev.reshape(2, T * Bp, H), p["w_ih_t"], p["bias"])
        xg = xg.reshape(T, Bp, 8 * H)
        prev = bilstm_recurrence(xg, p["w_hh_t"], H)          # (2, T, Bp, H)
        layer_outputs.append(prev)

    # concat_layers=True; per-layer feature order = [forward H | backward H]
    stacked = jnp.stack(layer_outputs, axis=0)                # (layers, 2, T, Bp, H)
    out = jnp.transpose(stacked, (3, 2, 0, 1, 4))             # (Bp, T, layers, dir, H)
    out = out.reshape(Bp, T, num_layers * 2 * H).astype(jnp.float32)
    return out[:B]                                            # (B, L, num_layers*2H)


# ----------------------------------------------------------------------------
# Pure-JAX reference (same bf16-storage / f32-accumulate math) for validation.
# ----------------------------------------------------------------------------
def _reference_forward(x, params, hidden_size, num_layers):
    B, L, _ = x.shape
    H = hidden_size
    xt = jnp.transpose(x, (1, 0, 2)).astype(jnp.bfloat16)     # (L, B, D)

    def run_dir(xg_dir, whh_t_dir, reverse):
        def step(carry, g):
            h, c = carry
            gates = g.astype(jnp.float32) + jnp.dot(
                h.astype(jnp.bfloat16), whh_t_dir, preferred_element_type=jnp.float32)
            i = jax.nn.sigmoid(gates[:, :H])
            f = jax.nn.sigmoid(gates[:, H:2 * H])
            gg = jnp.tanh(gates[:, 2 * H:3 * H])
            o = jax.nn.sigmoid(gates[:, 3 * H:4 * H])
            c = f * c + i * gg
            h = o * jnp.tanh(c)
            return (h, c), h
        init = (jnp.zeros((B, H), jnp.float32), jnp.zeros((B, H), jnp.float32))
        _, hs = jax.lax.scan(step, init, xg_dir, reverse=reverse)
        return hs                                             # (L, B, H) f32

    layer_in = xt
    outs = []
    for layer in range(num_layers):
        p = params[layer]
        xg = (jnp.dot(layer_in, p["w_ih_t"], preferred_element_type=jnp.float32)
              + p["bias"]).astype(jnp.bfloat16)
        hs_f = run_dir(xg[..., :4 * H], p["w_hh_t"][0], reverse=False)
        hs_b = run_dir(xg[..., 4 * H:], p["w_hh_t"][1], reverse=True)
        layer_in = jnp.concatenate([hs_f, hs_b], axis=-1).astype(jnp.bfloat16)
        outs.append(layer_in)
    out = jnp.concatenate(outs, axis=-1).astype(jnp.float32)
    return jnp.transpose(out, (1, 0, 2))


if __name__ == "__main__":
    # Small shapes consistent with the module's forward.
    batch, seq_len = 2, 8
    input_size, hidden_size, num_layers = 16, 32, 2

    key = jax.random.PRNGKey(0)
    key, kx = jax.random.split(key)
    x = jax.random.normal(kx, (batch, seq_len, input_size), dtype=jnp.float32)
    x_mask = jnp.zeros((batch, seq_len), dtype=jnp.int32)  # no padding -> unpadded path

    params = init_params(key, input_size, hidden_size, num_layers)

    fwd = jax.jit(stacked_brnn_forward, static_argnames=("hidden_size", "num_layers"))
    out = fwd(x, x_mask, params, hidden_size=hidden_size, num_layers=num_layers)
    out = jax.block_until_ready(out)

    expected_dim = num_layers * 2 * hidden_size
    assert out.shape == (batch, seq_len, expected_dim), out.shape
    assert jnp.isfinite(out).all()

    ref = _reference_forward(x, params, hidden_size, num_layers)
    max_err = float(jnp.max(jnp.abs(out - ref)))
    assert max_err < 1e-2, f"mismatch vs reference: {max_err}"

    print("KERNEL_OK")
</pallas_src>

<mosaic_0001>
module attributes {stable_mosaic.version = 11 : i64} {
  func.func @_proj_single_kernel(%arg0: i32, %arg1: memref<64x16xbf16, #tpu.memory_space<vmem>>, %arg2: memref<16x256xbf16, #tpu.memory_space<vmem>>, %arg3: memref<1x256xf32, #tpu.memory_space<vmem>>, %arg4: memref<64x256xbf16, #tpu.memory_space<vmem>>) attributes {dimension_semantics = [#tpu.dimension_semantics<parallel>], iteration_bounds = array<i64: 1>, scalar_prefetch = 0 : i64, scratch_operands = 0 : i64, tpu.core_type = #tpu.core_type<tc>, window_params = [{transform_indices = @transform_0, window_bounds = array<i64: 64, 16>}, {pipeline_mode = #tpu.pipeline_mode<synchronous>, transform_indices = @transform_1, window_bounds = array<i64: 16, 256>}, {pipeline_mode = #tpu.pipeline_mode<synchronous>, transform_indices = @transform_2, window_bounds = array<i64: 1, 256>}, {transform_indices = @transform_3, window_bounds = array<i64: 64, 256>}]} {
    %c0 = arith.constant 0 : index
    %c0_0 = arith.constant 0 : index
    %0 = vector.load %arg1[%c0, %c0_0] : memref<64x16xbf16, #tpu.memory_space<vmem>>, vector<64x16xbf16>
    %c0_1 = arith.constant 0 : index
    %c0_2 = arith.constant 0 : index
    %1 = vector.load %arg2[%c0_1, %c0_2] : memref<16x256xbf16, #tpu.memory_space<vmem>>, vector<16x256xbf16>
    %cst = arith.constant dense<0.000000e+00> : vector<64x256xf32>
    %2 = tpu.matmul %0, %1, %cst {dimension_numbers = #tpu.dot_dimension_numbers<[1], [0], [0], [1], [0, 0, 1, 1], [], []>} : vector<64x16xbf16>, vector<16x256xbf16>, vector<64x256xf32> -> vector<64x256xf32>
    %c0_3 = arith.constant 0 : index
    %c0_4 = arith.constant 0 : index
    %3 = vector.load %arg3[%c0_3, %c0_4] : memref<1x256xf32, #tpu.memory_space<vmem>>, vector<1x256xf32>
    %4 = vector.broadcast %3 : vector<1x256xf32> to vector<64x256xf32>
    %5 = arith.addf %2, %4 : vector<64x256xf32>
    %6 = arith.truncf %5 : vector<64x256xf32> to vector<64x256xbf16>
    %c0_5 = arith.constant 0 : index
    %c0_6 = arith.constant 0 : index
    %7 = vector.load %arg4[%c0_5, %c0_6] : memref<64x256xbf16, #tpu.memory_space<vmem>>, vector<64x256xbf16>
    tpu.vector_store %arg4[%c0_5, %c0_6], %6 {strides = array<i32>} : memref<64x256xbf16, #tpu.memory_space<vmem>>, vector<64x256xbf16>,
    return
  }
  func.func @transform_0(%arg0: i32) -> (i32, i32) {
    %c0_i32 = arith.constant 0 : i32
    %c0_i32_0 = arith.constant 0 : i32
    return %arg0, %c0_i32 : i32, i32
  }
  func.func @transform_1(%arg0: i32) -> (i32, i32) {
    %c0_i32 = arith.constant 0 : i32
    %c0_i32_0 = arith.constant 0 : i32
    %c0_i32_1 = arith.constant 0 : i32
    return %c0_i32, %c0_i32_0 : i32, i32
  }
  func.func @transform_2(%arg0: i32) -> (i32, i32) {
    %c0_i32 = arith.constant 0 : i32
    %c0_i32_0 = arith.constant 0 : i32
    %c0_i32_1 = arith.constant 0 : i32
    return %c0_i32, %c0_i32_0 : i32, i32
  }
  func.func @transform_3(%arg0: i32) -> (i32, i32) {
    %c0_i32 = arith.constant 0 : i32
    %c0_i32_0 = arith.constant 0 : i32
    return %arg0, %c0_i32 : i32, i32
  }
}

module attributes {stable_mosaic.version = 11 : i64} {
  func.func @_proj_dual_kernel(%arg0: i32, %arg1: memref<1x64x32xbf16, #tpu.memory_space<vmem>>, %arg2: memref<1x64x32xbf16, #tpu.memory_space<vmem>>, %arg3: memref<64x256xbf16, #tpu.memory_space<vmem>>, %arg4: memref<1x256xf32, #tpu.memory_space<vmem>>, %arg5: memref<64x256xbf16, #tpu.memory_space<vmem>>, %arg6: memref<64x64xbf16, #tpu.memory_space<vmem>>) attributes {dimension_semantics = [#tpu.dimension_semantics<parallel>], iteration_bounds = array<i64: 1>, scalar_prefetch = 0 : i64, scratch_operands = 1 : i64, tpu.core_type = #tpu.core_type<tc>, window_params = [{transform_indices = @transform_0, window_bounds = array<i64: 1, 64, 32>}, {transform_indices = @transform_1, window_bounds = array<i64: 1, 64, 32>}, {pipeline_mode = #tpu.pipeline_mode<synchronous>, transform_indices = @transform_2, window_bounds = array<i64: 64, 256>}, {pipeline_mode = #tpu.pipeline_mode<synchronous>, transform_indices = @transform_3, window_bounds = array<i64: 1, 256>}, {transform_indices = @transform_4, window_bounds = array<i64: 64, 256>}]} {
    %c0 = arith.constant 0 : index
    %c0_0 = arith.constant 0 : index
    %c0_1 = arith.constant 0 : index
    %0 = vector.load %arg1[%c0, %c0_0, %c0_1] : memref<1x64x32xbf16, #tpu.memory_space<vmem>>, vector<1x64x32xbf16>
    %1 = vector.shape_cast %0 : vector<1x64x32xbf16> to vector<64x32xbf16>
    %c0_2 = arith.constant 0 : index
    %c0_3 = arith.constant 0 : index
    %2 = vector.load %arg6[%c0_2, %c0_3] : memref<64x64xbf16, #tpu.memory_space<vmem>>, vector<64x32xbf16>
    tpu.vector_store %arg6[%c0_2, %c0_3], %1 {strides = array<i32>} : memref<64x64xbf16, #tpu.memory_space<vmem>>, vector<64x32xbf16>,
    %c0_4 = arith.constant 0 : index
    %c0_5 = arith.constant 0 : index
    %c0_6 = arith.constant 0 : index
    %3 = vector.load %arg2[%c0_4, %c0_5, %c0_6] : memref<1x64x32xbf16, #tpu.memory_space<vmem>>, vector<1x64x32xbf16>
    %4 = vector.shape_cast %3 : vector<1x64x32xbf16> to vector<64x32xbf16>
    %c0_7 = arith.constant 0 : index
    %c32 = arith.constant 32 : index
    %5 = vector.load %arg6[%c0_7, %c32] : memref<64x64xbf16, #tpu.memory_space<vmem>>, vector<64x32xbf16>
    tpu.vector_store %arg6[%c0_7, %c32], %4 {strides = array<i32>} : memref<64x64xbf16, #tpu.memory_space<vmem>>, vector<64x32xbf16>,
    %c0_8 = arith.constant 0 : index
    %c0_9 = arith.constant 0 : index
    %6 = vector.load %arg6[%c0_8, %c0_9] : memref<64x64xbf16, #tpu.memory_space<vmem>>, vector<64x64xbf16>
    %c0_10 = arith.constant 0 : index
    %c0_11 = arith.constant 0 : index
    %7 = vector.load %arg3[%c0_10, %c0_11] : memref<64x256xbf16, #tpu.memory_space<vmem>>, vector<64x256xbf16>
    %cst = arith.constant dense<0.000000e+00> : vector<64x256xf32>
    %8 = tpu.matmul %6, %7, %cst {dimension_numbers = #tpu.dot_dimension_numbers<[1], [0], [0], [1], [0, 0, 1, 1], [], []>} : vector<64x64xbf16>, vector<64x256xbf16>, vector<64x256xf32> -> vector<64x256xf32>
    %c0_12 = arith.constant 0 : index
    %c0_13 = arith.constant 0 : index
    %9 = vector.load %arg4[%c0_12, %c0_13] : memref<1x256xf32, #tpu.memory_space<vmem>>, vector<1x256xf32>
    %10 = vector.broadcast %9 : vector<1x256xf32> to vector<64x256xf32>
    %11 = arith.addf %8, %10 : vector<64x256xf32>
    %12 = arith.truncf %11 : vector<64x256xf32> to vector<64x256xbf16>
    %c0_14 = arith.constant 0 : index
    %c0_15 = arith.constant 0 : index
    %13 = vector.load %arg5[%c0_14, %c0_15] : memref<64x256xbf16, #tpu.memory_space<vmem>>, vector<64x256xbf16>
    tpu.vector_store %arg5[%c0_14, %c0_15], %12 {strides = array<i32>} : memref<64x256xbf16, #tpu.memory_space<vmem>>, vector<64x256xbf16>,
    return
  }
  func.func @transform_0(%arg0: i32) -> (i32, i32, i32) {
    %c0_i32 = arith.constant 0 : i32
    %c0_i32_0 = arith.constant 0 : i32
    %c0_i32_1 = arith.constant 0 : i32
    return %c0_i32, %arg0, %c0_i32_0 : i32, i32, i32
  }
  func.func @transform_1(%arg0: i32) -> (i32, i32, i32) {
    %c1_i32 = arith.constant 1 : i32
    %c0_i32 = arith.constant 0 : i32
    %c0_i32_0 = arith.constant 0 : i32
    return %c1_i32, %arg0, %c0_i32 : i32, i32, i32
  }
  func.func @transform_2(%arg0: i32) -> (i32, i32) {
    %c0_i32 = arith.constant 0 : i32
    %c0_i32_0 = arith.constant 0 : i32
    %c0_i32_1 = arith.constant 0 : i32
    return %c0_i32, %c0_i32_0 : i32, i32
  }
  func.func @transform_3(%arg0: i32) -> (i32, i32) {
    %c0_i32 = arith.constant 0 : i32
    %c0_i32_0 = arith.constant 0 : i32
    %c0_i32_1 = arith.constant 0 : i32
    return %c0_i32, %c0_i32_0 : i32, i32
  }
  func.func @transform_4(%arg0: i32) -> (i32, i32) {
    %c0_i32 = arith.constant 0 : i32
    %c0_i32_0 = arith.constant 0 : i32
    return %arg0, %c0_i32 : i32, i32
  }
}

module attributes {stable_mosaic.version = 11 : i64} {
  func.func @_bilstm_recurrence_kernel(%arg0: i32, %arg1: i32, %arg2: memref<8x8x128xbf16, #tpu.memory_space<vmem>>, %arg3: memref<1x32x128xbf16, #tpu.memory_space<vmem>>, %arg4: memref<1x8x8x32xbf16, #tpu.memory_space<vmem>>, %arg5: memref<8x32xf32, #tpu.memory_space<vmem>>, %arg6: memref<8x32xf32, #tpu.memory_space<vmem>>) attributes {dimension_semantics = [#tpu.dimension_semantics<parallel>, #tpu.dimension_semantics<arbitrary>], iteration_bounds = array<i64: 2, 1>, scalar_prefetch = 0 : i64, scratch_operands = 2 : i64, tpu.core_type = #tpu.core_type<tc>, window_params = [{transform_indices = @transform_0, window_bounds = array<i64: 8, 8, 128>}, {transform_indices = @transform_1, window_bounds = array<i64: 1, 32, 128>}, {transform_indices = @transform_2, window_bounds = array<i64: 1, 8, 8, 32>}]} {
    %c0_i32 = arith.constant 0 : i32
    %0 = arith.cmpi eq, %arg1, %c0_i32 : i32
    %1 = arith.extui %0 : i1 to i32
    %c0_i32_0 = arith.constant 0 : i32
    %2 = arith.cmpi ne, %1, %c0_i32_0 : i32
    scf.if %2 {
      %cst_110 = arith.constant 0.000000e+00 : f32
      %374 = vector.broadcast %cst_110 : f32 to vector<8x32xf32>
      %c0_111 = arith.constant 0 : index
      %c0_112 = arith.constant 0 : index
      %375 = vector.load %arg5[%c0_111, %c0_112] : memref<8x32xf32, #tpu.memory_space<vmem>>, vector<8x32xf32>
      tpu.vector_store %arg5[%c0_111, %c0_112], %374 {strides = array<i32>} : memref<8x32xf32, #tpu.memory_space<vmem>>, vector<8x32xf32>,
      %cst_113 = arith.constant 0.000000e+00 : f32
      %376 = vector.broadcast %cst_113 : f32 to vector<8x32xf32>
      %c0_114 = arith.constant 0 : index
      %c0_115 = arith.constant 0 : index
      %377 = vector.load %arg6[%c0_114, %c0_115] : memref<8x32xf32, #tpu.memory_space<vmem>>, vector<8x32xf32>
      tpu.vector_store %arg6[%c0_114, %c0_115], %376 {strides = array<i32>} : memref<8x32xf32, #tpu.memory_space<vmem>>, vector<8x32xf32>,
    } else {
    }
    %c2_i32 = arith.constant 2 : i32
    %3 = arith.muli %c2_i32, %arg1 : i32
    %c0_i32_1 = arith.constant 0 : i32
    %4 = arith.subi %c0_i32_1, %3 : i32
    %5 = arith.muli %arg0, %4 : i32
    %6 = arith.addi %arg1, %5 : i32
    %c8_i32 = arith.constant 8 : i32
    %7 = arith.muli %6, %c8_i32 : i32
    %c0 = arith.constant 0 : index
    %c0_2 = arith.constant 0 : index
    %c0_3 = arith.constant 0 : index
    %8 = vector.load %arg3[%c0, %c0_2, %c0_3] : memref<1x32x128xbf16, #tpu.memory_space<vmem>>, vector<1x32x128xbf16>
    %9 = vector.shape_cast %8 : vector<1x32x128xbf16> to vector<32x128xbf16>
    %c0_4 = arith.constant 0 : index
    %c0_5 = arith.constant 0 : index
    %10 = vector.load %arg5[%c0_4, %c0_5] : memref<8x32xf32, #tpu.memory_space<vmem>>, vector<8x32xf32>
    %c0_6 = arith.constant 0 : index
    %c0_7 = arith.constant 0 : index
    %11 = vector.load %arg6[%c0_6, %c0_7] : memref<8x32xf32, #tpu.memory_space<vmem>>, vector<8x32xf32>
    %c0_i32_8 = arith.constant 0 : i32
    %c2_i32_9 = arith.constant 2 : i32
    %12 = arith.muli %c2_i32_9, %c0_i32_8 : i32
    %c7_i32 = arith.constant 7 : i32
    %13 = arith.subi %c7_i32, %12 : i32
    %14 = arith.muli %arg0, %13 : i32
    %15 = arith.addi %c0_i32_8, %14 : i32
    %16 = arith.addi %7, %15 : i32
    %c8_i32_10 = arith.constant 8 : i32
    %17 = arith.cmpi slt, %16, %c8_i32_10 : i32
    %18 = arith.index_cast %15 : i32 to index
    %c0_11 = arith.constant 0 : index
    %c0_12 = arith.constant 0 : index
    %19 = vector.load %arg2[%18, %c0_11, %c0_12] : memref<8x8x128xbf16, #tpu.memory_space<vmem>>, vector<1x8x128xbf16>
    %20 = vector.shape_cast %19 : vector<1x8x128xbf16> to vector<8x128xbf16>
    %21 = arith.extf %20 : vector<8x128xbf16> to vector<8x128xf32>
    %22 = arith.truncf %10 : vector<8x32xf32> to vector<8x32xbf16>
    %cst = arith.constant dense<0.000000e+00> : vector<8x128xf32>
    %23 = tpu.matmul %22, %9, %cst {dimension_numbers = #tpu.dot_dimension_numbers<[1], [0], [0], [1], [0, 0, 1, 1], [], []>} : vector<8x32xbf16>, vector<32x128xbf16>, vector<8x128xf32> -> vector<8x128xf32>
    %24 = arith.addf %21, %23 : vector<8x128xf32>
    %25 = vector.extract_strided_slice %24 {offsets = [0, 0], sizes = [8, 32], strides = [1, 1]} : vector<8x128xf32> to vector<8x32xf32>
    %26 = arith.negf %25 : vector<8x32xf32>
    %27 = math.exp %26 : vector<8x32xf32>
    %cst_13 = arith.constant 1.000000e+00 : f32
    %28 = vector.broadcast %cst_13 : f32 to vector<8x32xf32>
    %29 = arith.addf %28, %27 : vector<8x32xf32>
    %30 = arith.divf %28, %29 : vector<8x32xf32>
    %31 = vector.extract_strided_slice %24 {offsets = [0, 32], sizes = [8, 32], strides = [1, 1]} : vector<8x128xf32> to vector<8x32xf32>
    %32 = arith.negf %31 : vector<8x32xf32>
    %33 = math.exp %32 : vector<8x32xf32>
    %cst_14 = arith.constant 1.000000e+00 : f32
    %34 = vector.broadcast %cst_14 : f32 to vector<8x32xf32>
    %35 = arith.addf %34, %33 : vector<8x32xf32>
    %36 = arith.divf %34, %35 : vector<8x32xf32>
    %37 = vector.extract_strided_slice %24 {offsets = [0, 64], sizes = [8, 32], strides = [1, 1]} : vector<8x128xf32> to vector<8x32xf32>
    %38 = math.tanh %37 : vector<8x32xf32>
    %39 = vector.extract_strided_slice %24 {offsets = [0, 96], sizes = [8, 32], strides = [1, 1]} : vector<8x128xf32> to vector<8x32xf32>
    %40 = arith.negf %39 : vector<8x32xf32>
    %41 = math.exp %40 : vector<8x32xf32>
    %cst_15 = arith.constant 1.000000e+00 : f32
    %42 = vector.broadcast %cst_15 : f32 to vector<8x32xf32>
    %43 = arith.addf %42, %41 : vector<8x32xf32>
    %44 = arith.divf %42, %43 : vector<8x32xf32>
    %45 = arith.mulf %36, %11 : vector<8x32xf32>
    %46 = arith.mulf %30, %38 : vector<8x32xf32>
    %47 = arith.addf %45, %46 : vector<8x32xf32>
    %48 = math.tanh %47 : vector<8x32xf32>
    %49 = arith.mulf %44, %48 : vector<8x32xf32>
    %50 = arith.truncf %49 : vector<8x32xf32> to vector<8x32xbf16>
    %c0_16 = arith.constant 0 : index
    %51 = arith.index_cast %15 : i32 to index
    %c0_17 = arith.constant 0 : index
    %c0_18 = arith.constant 0 : index
    %52 = vector.load %arg4[%c0_16, %51, %c0_17, %c0_18] : memref<1x8x8x32xbf16, #tpu.memory_space<vmem>>, vector<1x1x8x32xbf16>
    %53 = vector.shape_cast %52 : vector<1x1x8x32xbf16> to vector<8x32xbf16>
    %54 = vector.shape_cast %50 : vector<8x32xbf16> to vector<1x1x8x32xbf16>
    tpu.vector_store %arg4[%c0_16, %51, %c0_17, %c0_18], %54 {strides = array<i32>} : memref<1x8x8x32xbf16, #tpu.memory_space<vmem>>, vector<1x1x8x32xbf16>,
    %55 = arith.select %17, %49, %10 : vector<8x32xf32>
    %56 = arith.select %17, %47, %11 : vector<8x32xf32>
    %c1_i32 = arith.constant 1 : i32
    %c2_i32_19 = arith.constant 2 : i32
    %57 = arith.muli %c2_i32_19, %c1_i32 : i32
    %c7_i32_20 = arith.constant 7 : i32
    %58 = arith.subi %c7_i32_20, %57 : i32
    %59 = arith.muli %arg0, %58 : i32
    %60 = arith.addi %c1_i32, %59 : i32
    %61 = arith.addi %7, %60 : i32
    %c8_i32_21 = arith.constant 8 : i32
    %62 = arith.cmpi slt, %61, %c8_i32_21 : i32
    %63 = arith.index_cast %60 : i32 to index
    %c0_22 = arith.constant 0 : index
    %c0_23 = arith.constant 0 : index
    %64 = vector.load %arg2[%63, %c0_22, %c0_23] : memref<8x8x128xbf16, #tpu.memory_space<vmem>>, vector<1x8x128xbf16>
    %65 = vector.shape_cast %64 : vector<1x8x128xbf16> to vector<8x128xbf16>
    %66 = arith.extf %65 : vector<8x128xbf16> to vector<8x128xf32>
    %67 = arith.truncf %55 : vector<8x32xf32> to vector<8x32xbf16>
    %cst_24 = arith.constant dense<0.000000e+00> : vector<8x128xf32>
    %68 = tpu.matmul %67, %9, %cst_24 {dimension_numbers = #tpu.dot_dimension_numbers<[1], [0], [0], [1], [0, 0, 1, 1], [], []>} : vector<8x32xbf16>, vector<32x128xbf16>, vector<8x128xf32> -> vector<8x128xf32>
    %69 = arith.addf %66, %68 : vector<8x128xf32>
    %70 = vector.extract_strided_slice %69 {offsets = [0, 0], sizes = [8, 32], strides = [1, 1]} : vector<8x128xf32> to vector<8x32xf32>
    %71 = arith.negf %70 : vector<8x32xf32>
    %72 = math.exp %71 : vector<8x32xf32>
    %cst_25 = arith.constant 1.000000e+00 : f32
    %73 = vector.broadcast %cst_25 : f32 to vector<8x32xf32>
    %74 = arith.addf %73, %72 : vector<8x32xf32>
    %75 = arith.divf %73, %74 : vector<8x32xf32>
    %76 = vector.extract_strided_slice %69 {offsets = [0, 32], sizes = [8, 32], strides = [1, 1]} : vector<8x128xf32> to vector<8x32xf32>
    %77 = arith.negf %76 : vector<8x32xf32>
    %78 = math.exp %77 : vector<8x32xf32>
    %cst_26 = arith.constant 1.000000e+00 : f32
    %79 = vector.broadcast %cst_26 : f32 to vector<8x32xf32>
    %80 = arith.addf %79, %78 : vector<8x32xf32>
    %81 = arith.divf %79, %80 : vector<8x32xf32>
    %82 = vector.extract_strided_slice %69 {offsets = [0, 64], sizes = [8, 32], strides = [1, 1]} : vector<8x128xf32> to vector<8x32xf32>
    %83 = math.tanh %82 : vector<8x32xf32>
    %84 = vector.extract_strided_slice %69 {offsets = [0, 96], sizes = [8, 32], strides = [1, 1]} : vector<8x128xf32> to vector<8x32xf32>
    %85 = arith.negf %84 : vector<8x32xf32>
    %86 = math.exp %85 : vector<8x32xf32>
    %cst_27 = arith.constant 1.000000e+00 : f32
    %87 = vector.broadcast %cst_27 : f32 to vector<8x32xf32>
    %88 = arith.addf %87, %86 : vector<8x32xf32>
    %89 = arith.divf %87, %88 : vector<8x32xf32>
    %90 = arith.mulf %81, %56 : vector<8x32xf32>
    %91 = arith.mulf %75, %83 : vector<8x32xf32>
    %92 = arith.addf %90, %91 : vector<8x32xf32>
    %93 = math.tanh %92 : vector<8x32xf32>
    %94 = arith.mulf %89, %93 : vector<8x32xf32>
    %95 = arith.truncf %94 : vector<8x32xf32> to vector<8x32xbf16>
    %c0_28 = arith.constant 0 : index
    %96 = arith.index_cast %60 : i32 to index
    %c0_29 = arith.constant 0 : index
    %c0_30 = arith.constant 0 : index
    %97 = vector.load %arg4[%c0_28, %96, %c0_29, %c0_30] : memref<1x8x8x32xbf16, #tpu.memory_space<vmem>>, vector<1x1x8x32xbf16>
    %98 = vector.shape_cast %97 : vector<1x1x8x32xbf16> to vector<8x32xbf16>
    %99 = vector.shape_cast %95 : vector<8x32xbf16> to vector<1x1x8x32xbf16>
    tpu.vector_store %arg4[%c0_28, %96, %c0_29, %c0_30], %99 {strides = array<i32>} : memref<1x8x8x32xbf16, #tpu.memory_space<vmem>>, vector<1x1x8x32xbf16>,
    %100 = arith.select %62, %94, %55 : vector<8x32xf32>
    %101 = arith.select %62, %92, %56 : vector<8x32xf32>
    %c2_i32_31 = arith.constant 2 : i32
    %c2_i32_32 = arith.constant 2 : i32
    %102 = arith.muli %c2_i32_32, %c2_i32_31 : i32
    %c7_i32_33 = arith.constant 7 : i32
    %103 = arith.subi %c7_i32_33, %102 : i32
    %104 = arith.muli %arg0, %103 : i32
    %105 = arith.addi %c2_i32_31, %104 : i32
    %106 = arith.addi %7, %105 : i32
    %c8_i32_34 = arith.constant 8 : i32
    %107 = arith.cmpi slt, %106, %c8_i32_34 : i32
    %108 = arith.index_cast %105 : i32 to index
    %c0_35 = arith.constant 0 : index
    %c0_36 = arith.constant 0 : index
    %109 = vector.load %arg2[%108, %c0_35, %c0_36] : memref<8x8x128xbf16, #tpu.memory_space<vmem>>, vector<1x8x128xbf16>
    %110 = vector.shape_cast %109 : vector<1x8x128xbf16> to vector<8x128xbf16>
    %111 = arith.extf %110 : vector<8x128xbf16> to vector<8x128xf32>
    %112 = arith.truncf %100 : vector<8x32xf32> to vector<8x32xbf16>
    %cst_37 = arith.constant dense<0.000000e+00> : vector<8x128xf32>
    %113 = tpu.matmul %112, %9, %cst_37 {dimension_numbers = #tpu.dot_dimension_numbers<[1], [0], [0], [1], [0, 0, 1, 1], [], []>} : vector<8x32xbf16>, vector<32x128xbf16>, vector<8x128xf32> -> vector<8x128xf32>
    %114 = arith.addf %111, %113 : vector<8x128xf32>
    %115 = vector.extract_strided_slice %114 {offsets = [0, 0], sizes = [8, 32], strides = [1, 1]} : vector<8x128xf32> to vector<8x32xf32>
    %116 = arith.negf %115 : vector<8x32xf32>
    %117 = math.exp %116 : vector<8x32xf32>
    %cst_38 = arith.constant 1.000000e+00 : f32
    %118 = vector.broadcast %cst_38 : f32 to vector<8x32xf32>
    %119 = arith.addf %118, %117 : vector<8x32xf32>
    %120 = arith.divf %118, %119 : vector<8x32xf32>
    %121 = vector.extract_strided_slice %114 {offsets = [0, 32], sizes = [8, 32], strides = [1, 1]} : vector<8x128xf32> to vector<8x32xf32>
    %122 = arith.negf %121 : vector<8x32xf32>
    %123 = math.exp %122 : vector<8x32xf32>
    %cst_39 = arith.constant 1.000000e+00 : f32
    %124 = vector.broadcast %cst_39 : f32 to vector<8x32xf32>
    %125 = arith.addf %124, %123 : vector<8x32xf32>
    %126 = arith.divf %124, %125 : vector<8x32xf32>
    %127 = vector.extract_strided_slice %114 {offsets = [0, 64], sizes = [8, 32], strides = [1, 1]} : vector<8x128xf32> to vector<8x32xf32>
    %128 = math.tanh %127 : vector<8x32xf32>
    %129 = vector.extract_strided_slice %114 {offsets = [0, 96], sizes = [8, 32], strides = [1, 1]} : vector<8x128xf32> to vector<8x32xf32>
    %130 = arith.negf %129 : vector<8x32xf32>
    %131 = math.exp %130 : vector<8x32xf32>
    %cst_40 = arith.constant 1.000000e+00 : f32
    %132 = vector.broadcast %cst_40 : f32 to vector<8x32xf32>
    %133 = arith.addf %132, %131 : vector<8x32xf32>
    %134 = arith.divf %132, %133 : vector<8x32xf32>
    %135 = arith.mulf %126, %101 : vector<8x32xf32>
    %136 = arith.mulf %120, %128 : vector<8x32xf32>
    %137 = arith.addf %135, %136 : vector<8x32xf32>
    %138 = math.tanh %137 : vector<8x32xf32>
    %139 = arith.mulf %134, %138 : vector<8x32xf32>
    %140 = arith.truncf %139 : vector<8x32xf32> to vector<8x32xbf16>
    %c0_41 = arith.constant 0 : index
    %141 = arith.index_cast %105 : i32 to index
    %c0_42 = arith.constant 0 : index
    %c0_43 = arith.constant 0 : index
    %142 = vector.load %arg4[%c0_41, %141, %c0_42, %c0_43] : memref<1x8x8x32xbf16, #tpu.memory_space<vmem>>, vector<1x1x8x32xbf16>
    %143 = vector.shape_cast %142 : vector<1x1x8x32xbf16> to vector<8x32xbf16>
    %144 = vector.shape_cast %140 : vector<8x32xbf16> to vector<1x1x8x32xbf16>
    tpu.vector_store %arg4[%c0_41, %141, %c0_42, %c0_43], %144 {strides = array<i32>} : memref<1x8x8x32xbf16, #tpu.memory_space<vmem>>, vector<1x1x8x32xbf16>,
    %145 = arith.select %107, %139, %100 : vector<8x32xf32>
    %146 = arith.select %107, %137, %101 : vector<8x32xf32>
    %c3_i32 = arith.constant 3 : i32
    %c2_i32_44 = arith.constant 2 : i32
    %147 = arith.muli %c2_i32_44, %c3_i32 : i32
    %c7_i32_45 = arith.constant 7 : i32
    %148 = arith.subi %c7_i32_45, %147 : i32
    %149 = arith.muli %arg0, %148 : i32
    %150 = arith.addi %c3_i32, %149 : i32
    %151 = arith.addi %7, %150 : i32
    %c8_i32_46 = arith.constant 8 : i32
    %152 = arith.cmpi slt, %151, %c8_i32_46 : i32
    %153 = arith.index_cast %150 : i32 to index
    %c0_47 = arith.constant 0 : index
    %c0_48 = arith.constant 0 : index
    %154 = vector.load %arg2[%153, %c0_47, %c0_48] : memref<8x8x128xbf16, #tpu.memory_space<vmem>>, vector<1x8x128xbf16>
    %155 = vector.shape_cast %154 : vector<1x8x128xbf16> to vector<8x128xbf16>
    %156 = arith.extf %155 : vector<8x128xbf16> to vector<8x128xf32>
    %157 = arith.truncf %145 : vector<8x32xf32> to vector<8x32xbf16>
    %cst_49 = arith.constant dense<0.000000e+00> : vector<8x128xf32>
    %158 = tpu.matmul %157, %9, %cst_49 {dimension_numbers = #tpu.dot_dimension_numbers<[1], [0], [0], [1], [0, 0, 1, 1], [], []>} : vector<8x32xbf16>, vector<32x128xbf16>, vector<8x128xf32> -> vector<8x128xf32>
    %159 = arith.addf %156, %158 : vector<8x128xf32>
    %160 = vector.extract_strided_slice %159 {offsets = [0, 0], sizes = [8, 32], strides = [1, 1]} : vector<8x128xf32> to vector<8x32xf32>
    %161 = arith.negf %160 : vector<8x32xf32>
    %162 = math.exp %161 : vector<8x32xf32>
    %cst_50 = arith.constant 1.000000e+00 : f32
    %163 = vector.broadcast %cst_50 : f32 to vector<8x32xf32>
    %164 = arith.addf %163, %162 : vector<8x32xf32>
    %165 = arith.divf %163, %164 : vector<8x32xf32>
    %166 = vector.extract_strided_slice %159 {offsets = [0, 32], sizes = [8, 32], strides = [1, 1]} : vector<8x128xf32> to vector<8x32xf32>
    %167 = arith.negf %166 : vector<8x32xf32>
    %168 = math.exp %167 : vector<8x32xf32>
    %cst_51 = arith.constant 1.000000e+00 : f32
    %169 = vector.broadcast %cst_51 : f32 to vector<8x32xf32>
    %170 = arith.addf %169, %168 : vector<8x32xf32>
    %171 = arith.divf %169, %170 : vector<8x32xf32>
    %172 = vector.extract_strided_slice %159 {offsets = [0, 64], sizes = [8, 32], strides = [1, 1]} : vector<8x128xf32> to vector<8x32xf32>
    %173 = math.tanh %172 : vector<8x32xf32>
    %174 = vector.extract_strided_slice %159 {offsets = [0, 96], sizes = [8, 32], strides = [1, 1]} : vector<8x128xf32> to vector<8x32xf32>
    %175 = arith.negf %174 : vector<8x32xf32>
    %176 = math.exp %175 : vector<8x32xf32>
    %cst_52 = arith.constant 1.000000e+00 : f32
    %177 = vector.broadcast %cst_52 : f32 to vector<8x32xf32>
    %178 = arith.addf %177, %176 : vector<8x32xf32>
    %179 = arith.divf %177, %178 : vector<8x32xf32>
    %180 = arith.mulf %171, %146 : vector<8x32xf32>
    %181 = arith.mulf %165, %173 : vector<8x32xf32>
    %182 = arith.addf %180, %181 : vector<8x32xf32>
    %183 = math.tanh %182 : vector<8x32xf32>
    %184 = arith.mulf %179, %183 : vector<8x32xf32>
    %185 = arith.truncf %184 : vector<8x32xf32> to vector<8x32xbf16>
    %c0_53 = arith.constant 0 : index
    %186 = arith.index_cast %150 : i32 to index
    %c0_54 = arith.constant 0 : index
    %c0_55 = arith.constant 0 : index
    %187 = vector.load %arg4[%c0_53, %186, %c0_54, %c0_55] : memref<1x8x8x32xbf16, #tpu.memory_space<vmem>>, vector<1x1x8x32xbf16>
    %188 = vector.shape_cast %187 : vector<1x1x8x32xbf16> to vector<8x32xbf16>
    %189 = vector.shape_cast %185 : vector<8x32xbf16> to vector<1x1x8x32xbf16>
    tpu.vector_store %arg4[%c0_53, %186, %c0_54, %c0_55], %189 {strides = array<i32>} : memref<1x8x8x32xbf16, #tpu.memory_space<vmem>>, vector<1x1x8x32xbf16>,
    %190 = arith.select %152, %184, %145 : vector<8x32xf32>
    %191 = arith.select %152, %182, %146 : vector<8x32xf32>
    %c4_i32 = arith.constant 4 : i32
    %c2_i32_56 = arith.constant 2 : i32
    %192 = arith.muli %c2_i32_56, %c4_i32 : i32
    %c7_i32_57 = arith.constant 7 : i32
    %193 = arith.subi %c7_i32_57, %192 : i32
    %194 = arith.muli %arg0, %193 : i32
    %195 = arith.addi %c4_i32, %194 : i32
    %196 = arith.addi %7, %195 : i32
    %c8_i32_58 = arith.constant 8 : i32
    %197 = arith.cmpi slt, %196, %c8_i32_58 : i32
    %198 = arith.index_cast %195 : i32 to index
    %c0_59 = arith.constant 0 : index
    %c0_60 = arith.constant 0 : index
    %199 = vector.load %arg2[%198, %c0_59, %c0_60] : memref<8x8x128xbf16, #tpu.memory_space<vmem>>, vector<1x8x128xbf16>
    %200 = vector.shape_cast %199 : vector<1x8x128xbf16> to vector<8x128xbf16>
    %201 = arith.extf %200 : vector<8x128xbf16> to vector<8x128xf32>
    %202 = arith.truncf %190 : vector<8x32xf32> to vector<8x32xbf16>
    %cst_61 = arith.constant dense<0.000000e+00> : vector<8x128xf32>
    %203 = tpu.matmul %202, %9, %cst_61 {dimension_numbers = #tpu.dot_dimension_numbers<[1], [0], [0], [1], [0, 0, 1, 1], [], []>} : vector<8x32xbf16>, vector<32x128xbf16>, vector<8x128xf32> -> vector<8x128xf32>
    %204 = arith.addf %201, %203 : vector<8x128xf32>
    %205 = vector.extract_strided_slice %204 {offsets = [0, 0], sizes = [8, 32], strides = [1, 1]} : vector<8x128xf32> to vector<8x32xf32>
    %206 = arith.negf %205 : vector<8x32xf32>
    %207 = math.exp %206 : vector<8x32xf32>
    %cst_62 = arith.constant 1.000000e+00 : f32
    %208 = vector.broadcast %cst_62 : f32 to vector<8x32xf32>
    %209 = arith.addf %208, %207 : vector<8x32xf32>
    %210 = arith.divf %208, %209 : vector<8x32xf32>
    %211 = vector.extract_strided_slice %204 {offsets = [0, 32], sizes = [8, 32], strides = [1, 1]} : vector<8x128xf32> to vector<8x32xf32>
    %212 = arith.negf %211 : vector<8x32xf32>
    %213 = math.exp %212 : vector<8x32xf32>
    %cst_63 = arith.constant 1.000000e+00 : f32
    %214 = vector.broadcast %cst_63 : f32 to vector<8x32xf32>
    %215 = arith.addf %214, %213 : vector<8x32xf32>
    %216 = arith.divf %214, %215 : vector<8x32xf32>
    %217 = vector.extract_strided_slice %204 {offsets = [0, 64], sizes = [8, 32], strides = [1, 1]} : vector<8x128xf32> to vector<8x32xf32>
    %218 = math.tanh %217 : vector<8x32xf32>
    %219 = vector.extract_strided_slice %204 {offsets = [0, 96], sizes = [8, 32], strides = [1, 1]} : vector<8x128xf32> to vector<8x32xf32>
    %220 = arith.negf %219 : vector<8x32xf32>
    %221 = math.exp %220 : vector<8x32xf32>
    %cst_64 = arith.constant 1.000000e+00 : f32
    %222 = vector.broadcast %cst_64 : f32 to vector<8x32xf32>
    %223 = arith.addf %222, %221 : vector<8x32xf32>
    %224 = arith.divf %222, %223 : vector<8x32xf32>
    %225 = arith.mulf %216, %191 : vector<8x32xf32>
    %226 = arith.mulf %210, %218 : vector<8x32xf32>
    %227 = arith.addf %225, %226 : vector<8x32xf32>
    %228 = math.tanh %227 : vector<8x32xf32>
    %229 = arith.mulf %224, %228 : vector<8x32xf32>
    %230 = arith.truncf %229 : vector<8x32xf32> to vector<8x32xbf16>
    %c0_65 = arith.constant 0 : index
    %231 = arith.index_cast %195 : i32 to index
    %c0_66 = arith.constant 0 : index
    %c0_67 = arith.constant 0 : index
    %232 = vector.load %arg4[%c0_65, %231, %c0_66, %c0_67] : memref<1x8x8x32xbf16, #tpu.memory_space<vmem>>, vector<1x1x8x32xbf16>
    %233 = vector.shape_cast %232 : vector<1x1x8x32xbf16> to vector<8x32xbf16>
    %234 = vector.shape_cast %230 : vector<8x32xbf16> to vector<1x1x8x32xbf16>
    tpu.vector_store %arg4[%c0_65, %231, %c0_66, %c0_67], %234 {strides = array<i32>} : memref<1x8x8x32xbf16, #tpu.memory_space<vmem>>, vector<1x1x8x32xbf16>,
    %235 = arith.select %197, %229, %190 : vector<8x32xf32>
    %236 = arith.select %197, %227, %191 : vector<8x32xf32>
    %c5_i32 = arith.constant 5 : i32
    %c2_i32_68 = arith.constant 2 : i32
    %237 = arith.muli %c2_i32_68, %c5_i32 : i32
    %c7_i32_69 = arith.constant 7 : i32
    %238 = arith.subi %c7_i32_69, %237 : i32
    %239 = arith.muli %arg0, %238 : i32
    %240 = arith.addi %c5_i32, %239 : i32
    %241 = arith.addi %7, %240 : i32
    %c8_i32_70 = arith.constant 8 : i32
    %242 = arith.cmpi slt, %241, %c8_i32_70 : i32
    %243 = arith.index_cast %240 : i32 to index
    %c0_71 = arith.constant 0 : index
    %c0_72 = arith.constant 0 : index
    %244 = vector.load %arg2[%243, %c0_71, %c0_72] : memref<8x8x128xbf16, #tpu.memory_space<vmem>>, vector<1x8x128xbf16>
    %245 = vector.shape_cast %244 : vector<1x8x128xbf16> to vector<8x128xbf16>
    %246 = arith.extf %245 : vector<8x128xbf16> to vector<8x128xf32>
    %247 = arith.truncf %235 : vector<8x32xf32> to vector<8x32xbf16>
    %cst_73 = arith.constant dense<0.000000e+00> : vector<8x128xf32>
    %248 = tpu.matmul %247, %9, %cst_73 {dimension_numbers = #tpu.dot_dimension_numbers<[1], [0], [0], [1], [0, 0, 1, 1], [], []>} : vector<8x32xbf16>, vector<32x128xbf16>, vector<8x128xf32> -> vector<8x128xf32>
    %249 = arith.addf %246, %248 : vector<8x128xf32>
    %250 = vector.extract_strided_slice %249 {offsets = [0, 0], sizes = [8, 32], strides = [1, 1]} : vector<8x128xf32> to vector<8x32xf32>
    %251 = arith.negf %250 : vector<8x32xf32>
    %252 = math.exp %251 : vector<8x32xf32>
    %cst_74 = arith.constant 1.000000e+00 : f32
    %253 = vector.broadcast %cst_74 : f32 to vector<8x32xf32>
    %254 = arith.addf %253, %252 : vector<8x32xf32>
    %255 = arith.divf %253, %254 : vector<8x32xf32>
    %256 = vector.extract_strided_slice %249 {offsets = [0, 32], sizes = [8, 32], strides = [1, 1]} : vector<8x128xf32> to vector<8x32xf32>
    %257 = arith.negf %256 : vector<8x32xf32>
    %258 = math.exp %257 : vector<8x32xf32>
    %cst_75 = arith.constant 1.000000e+00 : f32
    %259 = vector.broadcast %cst_75 : f32 to vector<8x32xf32>
    %260 = arith.addf %259, %258 : vector<8x32xf32>
    %261 = arith.divf %259, %260 : vector<8x32xf32>
    %262 = vector.extract_strided_slice %249 {offsets = [0, 64], sizes = [8, 32], strides = [1, 1]} : vector<8x128xf32> to vector<8x32xf32>
    %263 = math.tanh %262 : vector<8x32xf32>
    %264 = vector.extract_strided_slice %249 {offsets = [0, 96], sizes = [8, 32], strides = [1, 1]} : vector<8x128xf32> to vector<8x32xf32>
    %265 = arith.negf %264 : vector<8x32xf32>
    %266 = math.exp %265 : vector<8x32xf32>
    %cst_76 = arith.constant 1.000000e+00 : f32
    %267 = vector.broadcast %cst_76 : f32 to vector<8x32xf32>
    %268 = arith.addf %267, %266 : vector<8x32xf32>
    %269 = arith.divf %267, %268 : vector<8x32xf32>
    %270 = arith.mulf %261, %236 : vector<8x32xf32>
    %271 = arith.mulf %255, %263 : vector<8x32xf32>
    %272 = arith.addf %270, %271 : vector<8x32xf32>
    %273 = math.tanh %272 : vector<8x32xf32>
    %274 = arith.mulf %269, %273 : vector<8x32xf32>
    %275 = arith.truncf %274 : vector<8x32xf32> to vector<8x32xbf16>
    %c0_77 = arith.constant 0 : index
    %276 = arith.index_cast %240 : i32 to index
    %c0_78 = arith.constant 0 : index
    %c0_79 = arith.constant 0 : index
    %277 = vector.load %arg4[%c0_77, %276, %c0_78, %c0_79] : memref<1x8x8x32xbf16, #tpu.memory_space<vmem>>, vector<1x1x8x32xbf16>
    %278 = vector.shape_cast %277 : vector<1x1x8x32xbf16> to vector<8x32xbf16>
    %279 = vector.shape_cast %275 : vector<8x32xbf16> to vector<1x1x8x32xbf16>
    tpu.vector_store %arg4[%c0_77, %276, %c0_78, %c0_79], %279 {strides = array<i32>} : memref<1x8x8x32xbf16, #tpu.memory_space<vmem>>, vector<1x1x8x32xbf16>,
    %280 = arith.select %242, %274, %235 : vector<8x32xf32>
    %281 = arith.select %242, %272, %236 : vector<8x32xf32>
    %c6_i32 = arith.constant 6 : i32
    %c2_i32_80 = arith.constant 2 : i32
    %282 = arith.muli %c2_i32_80, %c6_i32 : i32
    %c7_i32_81 = arith.constant 7 : i32
    %283 = arith.subi %c7_i32_81, %282 : i32
    %284 = arith.muli %arg0, %283 : i32
    %285 = arith.addi %c6_i32, %284 : i32
    %286 = arith.addi %7, %285 : i32
    %c8_i32_82 = arith.constant 8 : i32
    %287 = arith.cmpi slt, %286, %c8_i32_82 : i32
    %288 = arith.index_cast %285 : i32 to index
    %c0_83 = arith.constant 0 : index
    %c0_84 = arith.constant 0 : index
    %289 = vector.load %arg2[%288, %c0_83, %c0_84] : memref<8x8x128xbf16, #tpu.memory_space<vmem>>, vector<1x8x128xbf16>
    %290 = vector.shape_cast %289 : vector<1x8x128xbf16> to vector<8x128xbf16>
    %291 = arith.extf %290 : vector<8x128xbf16> to vector<8x128xf32>
    %292 = arith.truncf %280 : vector<8x32xf32> to vector<8x32xbf16>
    %cst_85 = arith.constant dense<0.000000e+00> : vector<8x128xf32>
    %293 = tpu.matmul %292, %9, %cst_85 {dimension_numbers = #tpu.dot_dimension_numbers<[1], [0], [0], [1], [0, 0, 1, 1], [], []>} : vector<8x32xbf16>, vector<32x128xbf16>, vector<8x128xf32> -> vector<8x128xf32>
    %294 = arith.addf %291, %293 : vector<8x128xf32>
    %295 = vector.extract_strided_slice %294 {offsets = [0, 0], sizes = [8, 32], strides = [1, 1]} : vector<8x128xf32> to vector<8x32xf32>
    %296 = arith.negf %295 : vector<8x32xf32>
    %297 = math.exp %296 : vector<8x32xf32>
    %cst_86 = arith.constant 1.000000e+00 : f32
    %298 = vector.broadcast %cst_86 : f32 to vector<8x32xf32>
    %299 = arith.addf %298, %297 : vector<8x32xf32>
    %300 = arith.divf %298, %299 : vector<8x32xf32>
    %301 = vector.extract_strided_slice %294 {offsets = [0, 32], sizes = [8, 32], strides = [1, 1]} : vector<8x128xf32> to vector<8x32xf32>
    %302 = arith.negf %301 : vector<8x32xf32>
    %303 = math.exp %302 : vector<8x32xf32>
    %cst_87 = arith.constant 1.000000e+00 : f32
    %304 = vector.broadcast %cst_87 : f32 to vector<8x32xf32>
    %305 = arith.addf %304, %303 : vector<8x32xf32>
    %306 = arith.divf %304, %305 : vector<8x32xf32>
    %307 = vector.extract_strided_slice %294 {offsets = [0, 64], sizes = [8, 32], strides = [1, 1]} : vector<8x128xf32> to vector<8x32xf32>
    %308 = math.tanh %307 : vector<8x32xf32>
    %309 = vector.extract_strided_slice %294 {offsets = [0, 96], sizes = [8, 32], strides = [1, 1]} : vector<8x128xf32> to vector<8x32xf32>
    %310 = arith.negf %309 : vector<8x32xf32>
    %311 = math.exp %310 : vector<8x32xf32>
    %cst_88 = arith.constant 1.000000e+00 : f32
    %312 = vector.broadcast %cst_88 : f32 to vector<8x32xf32>
    %313 = arith.addf %312, %311 : vector<8x32xf32>
    %314 = arith.divf %312, %313 : vector<8x32xf32>
    %315 = arith.mulf %306, %281 : vector<8x32xf32>
    %316 = arith.mulf %300, %308 : vector<8x32xf32>
    %317 = arith.addf %315, %316 : vector<8x32xf32>
    %318 = math.tanh %317 : vector<8x32xf32>
    %319 = arith.mulf %314, %318 : vector<8x32xf32>
    %320 = arith.truncf %319 : vector<8x32xf32> to vector<8x32xbf16>
    %c0_89 = arith.constant 0 : index
    %321 = arith.index_cast %285 : i32 to index
    %c0_90 = arith.constant 0 : index
    %c0_91 = arith.constant 0 : index
    %322 = vector.load %arg4[%c0_89, %321, %c0_90, %c0_91] : memref<1x8x8x32xbf16, #tpu.memory_space<vmem>>, vector<1x1x8x32xbf16>
    %323 = vector.shape_cast %322 : vector<1x1x8x32xbf16> to vector<8x32xbf16>
    %324 = vector.shape_cast %320 : vector<8x32xbf16> to vector<1x1x8x32xbf16>
    tpu.vector_store %arg4[%c0_89, %321, %c0_90, %c0_91], %324 {strides = array<i32>} : memref<1x8x8x32xbf16, #tpu.memory_space<vmem>>, vector<1x1x8x32xbf16>,
    %325 = arith.select %287, %319, %280 : vector<8x32xf32>
    %326 = arith.select %287, %317, %281 : vector<8x32xf32>
    %c7_i32_92 = arith.constant 7 : i32
    %c2_i32_93 = arith.constant 2 : i32
    %327 = arith.muli %c2_i32_93, %c7_i32_92 : i32
    %c7_i32_94 = arith.constant 7 : i32
    %328 = arith.subi %c7_i32_94, %327 : i32
    %329 = arith.muli %arg0, %328 : i32
    %330 = arith.addi %c7_i32_92, %329 : i32
    %331 = arith.addi %7, %330 : i32
    %c8_i32_95 = arith.constant 8 : i32
    %332 = arith.cmpi slt, %331, %c8_i32_95 : i32
    %333 = arith.index_cast %330 : i32 to index
    %c0_96 = arith.constant 0 : index
    %c0_97 = arith.constant 0 : index
    %334 = vector.load %arg2[%333, %c0_96, %c0_97] : memref<8x8x128xbf16, #tpu.memory_space<vmem>>, vector<1x8x128xbf16>
    %335 = vector.shape_cast %334 : vector<1x8x128xbf16> to vector<8x128xbf16>
    %336 = arith.extf %335 : vector<8x128xbf16> to vector<8x128xf32>
    %337 = arith.truncf %325 : vector<8x32xf32> to vector<8x32xbf16>
    %cst_98 = arith.constant dense<0.000000e+00> : vector<8x128xf32>
    %338 = tpu.matmul %337, %9, %cst_98 {dimension_numbers = #tpu.dot_dimension_numbers<[1], [0], [0], [1], [0, 0, 1, 1], [], []>} : vector<8x32xbf16>, vector<32x128xbf16>, vector<8x128xf32> -> vector<8x128xf32>
    %339 = arith.addf %336, %338 : vector<8x128xf32>
    %340 = vector.extract_strided_slice %339 {offsets = [0, 0], sizes = [8, 32], strides = [1, 1]} : vector<8x128xf32> to vector<8x32xf32>
    %341 = arith.negf %340 : vector<8x32xf32>
    %342 = math.exp %341 : vector<8x32xf32>
    %cst_99 = arith.constant 1.000000e+00 : f32
    %343 = vector.broadcast %cst_99 : f32 to vector<8x32xf32>
    %344 = arith.addf %343, %342 : vector<8x32xf32>
    %345 = arith.divf %343, %344 : vector<8x32xf32>
    %346 = vector.extract_strided_slice %339 {offsets = [0, 32], sizes = [8, 32], strides = [1, 1]} : vector<8x128xf32> to vector<8x32xf32>
    %347 = arith.negf %346 : vector<8x32xf32>
    %348 = math.exp %347 : vector<8x32xf32>
    %cst_100 = arith.constant 1.000000e+00 : f32
    %349 = vector.broadcast %cst_100 : f32 to vector<8x32xf32>
    %350 = arith.addf %349, %348 : vector<8x32xf32>
    %351 = arith.divf %349, %350 : vector<8x32xf32>
    %352 = vector.extract_strided_slice %339 {offsets = [0, 64], sizes = [8, 32], strides = [1, 1]} : vector<8x128xf32> to vector<8x32xf32>
    %353 = math.tanh %352 : vector<8x32xf32>
    %354 = vector.extract_strided_slice %339 {offsets = [0, 96], sizes = [8, 32], strides = [1, 1]} : vector<8x128xf32> to vector<8x32xf32>
    %355 = arith.negf %354 : vector<8x32xf32>
    %356 = math.exp %355 : vector<8x32xf32>
    %cst_101 = arith.constant 1.000000e+00 : f32
    %357 = vector.broadcast %cst_101 : f32 to vector<8x32xf32>
    %358 = arith.addf %357, %356 : vector<8x32xf32>
    %359 = arith.divf %357, %358 : vector<8x32xf32>
    %360 = arith.mulf %351, %326 : vector<8x32xf32>
    %361 = arith.mulf %345, %353 : vector<8x32xf32>
    %362 = arith.addf %360, %361 : vector<8x32xf32>
    %363 = math.tanh %362 : vector<8x32xf32>
    %364 = arith.mulf %359, %363 : vector<8x32xf32>
    %365 = arith.truncf %364 : vector<8x32xf32> to vector<8x32xbf16>
    %c0_102 = arith.constant 0 : index
    %366 = arith.index_cast %330 : i32 to index
    %c0_103 = arith.constant 0 : index
    %c0_104 = arith.constant 0 : index
    %367 = vector.load %arg4[%c0_102, %366, %c0_103, %c0_104] : memref<1x8x8x32xbf16, #tpu.memory_space<vmem>>, vector<1x1x8x32xbf16>
    %368 = vector.shape_cast %367 : vector<1x1x8x32xbf16> to vector<8x32xbf16>
    %369 = vector.shape_cast %365 : vector<8x32xbf16> to vector<1x1x8x32xbf16>
    tpu.vector_store %arg4[%c0_102, %366, %c0_103, %c0_104], %369 {strides = array<i32>} : memref<1x8x8x32xbf16, #tpu.memory_space<vmem>>, vector<1x1x8x32xbf16>,
    %370 = arith.select %332, %364, %325 : vector<8x32xf32>
    %371 = arith.select %332, %362, %326 : vector<8x32xf32>
    %c8_i32_105 = arith.constant 8 : i32
    %c0_106 = arith.constant 0 : index
    %c0_107 = arith.constant 0 : index
    %372 = vector.load %arg5[%c0_106, %c0_107] : memref<8x32xf32, #tpu.memory_space<vmem>>, vector<8x32xf32>
    tpu.vector_store %arg5[%c0_106, %c0_107], %370 {strides = array<i32>} : memref<8x32xf32, #tpu.memory_space<vmem>>, vector<8x32xf32>,
    %c0_108 = arith.constant 0 : index
    %c0_109 = arith.constant 0 : index
    %373 = vector.load %arg6[%c0_108, %c0_109] : memref<8x32xf32, #tpu.memory_space<vmem>>, vector<8x32xf32>
    tpu.vector_store %arg6[%c0_108, %c0_109], %371 {strides = array<i32>} : memref<8x32xf32, #tpu.memory_space<vmem>>, vector<8x32xf32>,
    return
  }
  func.func @transform_0(%arg0: i32, %arg1: i32) -> (i32, i32, i32) {
    %c2_i32 = arith.constant 2 : i32
    %0 = arith.muli %c2_i32, %arg1 : i32
    %c0_i32 = arith.constant 0 : i32
    %1 = arith.subi %c0_i32, %0 : i32
    %2 = arith.muli %arg0, %1 : i32
    %3 = arith.addi %arg1, %2 : i32
    %c0_i32_0 = arith.constant 0 : i32
    %c0_i32_1 = arith.constant 0 : i32
    return %3, %c0_i32_0, %arg0 : i32, i32, i32
  }
  func.func @transform_1(%arg0: i32, %arg1: i32) -> (i32, i32, i32) {
    %c0_i32 = arith.constant 0 : i32
    %c0_i32_0 = arith.constant 0 : i32
    %c0_i32_1 = arith.constant 0 : i32
    return %arg0, %c0_i32, %c0_i32_0 : i32, i32, i32
  }
  func.func @transform_2(%arg0: i32, %arg1: i32) -> (i32, i32, i32, i32) {
    %c2_i32 = arith.constant 2 : i32
    %0 = arith.muli %c2_i32, %arg1 : i32
    %c0_i32 = arith.constant 0 : i32
    %1 = arith.subi %c0_i32, %0 : i32
    %2 = arith.muli %arg0, %1 : i32
    %3 = arith.addi %arg1, %2 : i32
    %c0_i32_0 = arith.constant 0 : i32
    %c0_i32_1 = arith.constant 0 : i32
    %c0_i32_2 = arith.constant 0 : i32
    return %arg0, %3, %c0_i32_0, %c0_i32_1 : i32, i32, i32, i32
  }
}

</mosaic_0001>

<bundles_post_ra>
// kernel: stacked_brnn_forward.6
= control target key start
LH: loop header
LB: loop body
LE: loop exit
PB: predicated region body
PF: predicated region fallthrough
CT: control target
= control target key end

     0   :  { %s345_s19 = smov 32   ;;  %vm29_vm0 = vcmask 257024   ;;  %vm78_vm1 = vcmask 519424   ;;  %vm169_vm2 = vcmask 523264   ;;  %s518_s1 = inlined_call_operand.vmem [shape: bf16[2,64,32], index: 1, kind: input, shape index: {}, may-alias: {0,1}]   ;;  %s519_s0 = inlined_call_operand.vmem [shape: bf16[2,64,32], index: 0, kind: input, shape index: {}, may-alias: {0,1}]   ;;  %s520_s2 = inlined_call_operand.vmem [shape: bf16[64,256], index: 2, kind: input, shape index: {}]   ;;  %s521_s3 = inlined_call_operand.vmem [shape: f32[1,256], index: 3, kind: input, shape index: {}]   ;;  %s522_s4 = inlined_call_operand.vmem [shape: bf16[64,256], index: 4, kind: output, shape index: {}]  }
   0x1   :  { %v264_v0 = vld [vmem:[%s518_s1 + $0x30] sm:$0xf]  ;;  %v260_v1 = vld [vmem:[%s518_s1 + $0x20] sm:$0xf]  ;;  %v266_v2 = vld [vmem:[%s518_s1 + $0x38] sm:$0xf] }
   0x2   :  { %62 = vrot.lane.b32.xlu0 %v264_v0, %s345_s19  ;;  %54 = vrot.lane.b32.xlu1 %v260_v1, %s345_s19  ;;  %v265_v3 = vld [vmem:[%s518_s1 + $0x34] sm:$0xf]  ;;  %v261_v4 = vld [vmem:[%s518_s1 + $0x24] sm:$0xf] }
   0x3   :  { %66 = vrot.lane.b32.xlu2 %v266_v2, %s345_s19  ;;  %v267_v5 = vld [vmem:[%s518_s1 + $0x3c] sm:$0xf]  ;;  %v262_v6 = vld [vmem:[%s518_s1 + $0x28] sm:$0xf]  ;;  %v263_v7 = vld [vmem:[%s518_s1 + $0x2c] sm:$0xf] }
   0x4   :  { %v25_v8 = vld [vmem:[%s519_s0 + $0x10] sm:$0xf]  ;;  %v335_v10 = vld [vmem:[%s520_s2 + $0x34] sm:$0xf0]  ;;  %v21_v11 = vld [vmem:[%s519_s0] sm:$0xf] }
   0x5   :  { %34 = vst.msk [vmem:[#allocation2 + $0x10] sm:$0xf] %vm29_vm0, %v25_v8  ;;  %v310_v9 = vld [vmem:[%s520_s2 + $0x30] sm:$0xf]  ;;  %v334_v13 = vld [vmem:[%s520_s2 + $0x34] sm:$0xf] }
   0x6   :  { %v311_v12 = vor.u32 %v335_v10, %v310_v9  ;;  %v312_v14 = vld [vmem:[%s520_s2 + $0x38] sm:$0xf0]  ;;  %30 = vst.msk [vmem:[#allocation2] sm:$0xf] %vm29_vm0, %v21_v11  ;;  %v302_v16 = vld [vmem:[%s520_s2 + $0x20] sm:$0xf] }
   0x7   :  { %v315_v15 = vor.u32 %v334_v13, %v312_v14  ;;  %v333_v17 = vld [vmem:[%s520_s2 + $0x24] sm:$0xf0]  ;;  %v332_v19 = vld [vmem:[%s520_s2 + $0x24] sm:$0xf]  ;;  %v304_v20 = vld [vmem:[%s520_s2 + $0x28] sm:$0xf0] }
   0x8   :  { %186 = vmatpush.bf16.msra.mxu0 %v311_v12  ;;  %336 = vmatpush.bf16.msra.mxu2 %v311_v12  ;;  %v303_v18 = vor.u32 %v333_v17, %v302_v16  ;;  %v27_v21 = vld [vmem:[%s519_s0 + $0x18] sm:$0xf]  ;;  %v307_v22 = vor.u32 %v332_v19, %v304_v20  ;;  %v26_v23 = vld [vmem:[%s519_s0 + $0x14] sm:$0xf]  ;;  %v22_v24 = vld [vmem:[%s519_s0 + $0x4] sm:$0xf] }
   0x9   :  { %215 = vmatpush.bf16.msra.mxu1 %v315_v15  ;;  %340 = vmatpush.bf16.msra.mxu3 %v315_v15  ;;  %36 = vst.msk [vmem:[#allocation2 + $0x18] sm:$0xf] %vm29_vm0, %v27_v21  ;;  %v294_v25 = vld [vmem:[%s520_s2 + $0x10] sm:$0xf]  ;;  %v331_v26 = vld [vmem:[%s520_s2 + $0x14] sm:$0xf0] }
   0xa   :  { %64 = vrot.lane.b32.xlu0 %v265_v3, %s345_s19  ;;  %56 = vrot.lane.b32.xlu1 %v261_v4, %s345_s19  ;;  %35 = vst.msk [vmem:[#allocation2 + $0x14] sm:$0xf] %vm29_vm0, %v26_v23  ;;  %v295_v28 = vor.u32 %v331_v26, %v294_v25  ;;  %v330_v29 = vld [vmem:[%s520_s2 + $0x14] sm:$0xf]  ;;  %v296_v30 = vld [vmem:[%s520_s2 + $0x18] sm:$0xf0] }
   0xb   :  { %68 = vrot.lane.b32.xlu2 %v267_v5, %s345_s19  ;;  %31 = vst.msk [vmem:[#allocation2 + $0x4] sm:$0xf] %vm29_vm0, %v22_v24  ;;  %v286_v31 = vld [vmem:[%s520_s2] sm:$0xf]  ;;  %v299_v32 = vor.u32 %v330_v29, %v296_v30  ;;  %v329_v33 = vld [vmem:[%s520_s2 + $0x4] sm:$0xf0] }
   0xc   :  { %187 = vmatpush.bf16.msra.mxu0 %v303_v18  ;;  %337 = vmatpush.bf16.msra.mxu2 %v303_v18  ;;  %v328_v34 = vld [vmem:[%s520_s2 + $0x4] sm:$0xf]  ;;  %v287_v35 = vor.u32 %v329_v33, %v286_v31  ;;  %v288_v36 = vld [vmem:[%s520_s2 + $0x8] sm:$0xf0]  ;;  %v28_v37 = vld [vmem:[%s519_s0 + $0x1c] sm:$0xf] }
   0xd   :  { %216 = vmatpush.bf16.msra.mxu1 %v307_v22  ;;  %341 = vmatpush.bf16.msra.mxu3 %v307_v22  ;;  %v291_v38 = vor.u32 %v328_v34, %v288_v36  ;;  %37 = vst.msk [vmem:[#allocation2 + $0x1c] sm:$0xf] %vm29_vm0, %v28_v37  ;;  %v23_v40 = vld [vmem:[%s519_s0 + $0x8] sm:$0xf]  ;;  %v24_v41 = vld [vmem:[%s519_s0 + $0xc] sm:$0xf] }
   0xe   :  { %32 = vst.msk [vmem:[#allocation2 + $0x8] sm:$0xf] %vm29_vm0, %v23_v40  ;;  %v103_v52 = vld [vmem:[%s521_s3] sm:$0x3] }
   0xf   :  { %33 = vst.msk [vmem:[#allocation2 + $0xc] sm:$0xf] %vm29_vm0, %v24_v41  ;;  %v105_v53 = vperm.slane %v103_v52, 0  ;;  %v106_v54 = vperm.slane %v103_v52, 1 }
  0x10   :  { %188 = vmatpush.bf16.msra.mxu0 %v295_v28  ;;  %338 = vmatpush.bf16.msra.mxu2 %v295_v28 }
  0x11   :  { %217 = vmatpush.bf16.msra.mxu1 %v299_v32  ;;  %342 = vmatpush.bf16.msra.mxu3 %v299_v32 }
  0x12   :  { %58 = vrot.lane.b32.xlu0 %v262_v6, %s345_s19  ;;  %60 = vrot.lane.b32.xlu1 %v263_v7, %s345_s19 }
  0x14   :  { %189 = vmatpush.bf16.msra.mxu0 %v287_v35  ;;  %339 = vmatpush.bf16.msra.mxu2 %v287_v35 }
  0x15   :  { %218 = vmatpush.bf16.msra.mxu1 %v291_v38  ;;  %343 = vmatpush.bf16.msra.mxu3 %v291_v38 }
  0x5d   :  { %v67_v27 = vpop.permute.xlu2 %66 }
  0x5e   :  { %85 = vst.msk [vmem:[#allocation2 + $0x18] sm:$0xf] %vm78_vm1, %v67_v27 }
  0x65   :  { %v69_v39 = vpop.permute.xlu2 %68 }
  0x66   :  { %86 = vst.msk [vmem:[#allocation2 + $0x1c] sm:$0xf] %vm78_vm1, %v69_v39 }
  0x6d   :  { %v327_v51 = vld [vmem:[#allocation2 + $0x18] sm:$0xff] }
  0x74   :  { %v63_v42 = vpop.permute.xlu0 %62  ;;  %v55_v43 = vpop.permute.xlu1 %54 }
  0x75   :  { %83 = vst.msk [vmem:[#allocation2 + $0x10] sm:$0xf] %vm78_vm1, %v63_v42 }
  0x76   :  { %79 = vst.msk [vmem:[#allocation2] sm:$0xf] %vm78_vm1, %v55_v43 }
  0x7c   :  { %v65_v44 = vpop.permute.xlu0 %64  ;;  %v57_v45 = vpop.permute.xlu1 %56 }
  0x7d   :  { %84 = vst.msk [vmem:[#allocation2 + $0x14] sm:$0xf] %vm78_vm1, %v65_v44 }
  0x7e   :  { %80 = vst.msk [vmem:[#allocation2 + $0x4] sm:$0xf] %vm78_vm1, %v57_v45 }
  0x84   :  { %v326_v46 = vld [vmem:[#allocation2 + $0x10] sm:$0xff]  ;;  %v59_v47 = vpop.permute.xlu0 %58  ;;  %v61_v48 = vpop.permute.xlu1 %60 }
  0x85   :  { %v324_v49 = vld [vmem:[#allocation2] sm:$0xff]  ;;  %81 = vst.msk [vmem:[#allocation2 + $0x8] sm:$0xf] %vm78_vm1, %v59_v47  ;;  %318 = vmatmul.msk.bf16.vlgmr.msra.gmra.mxu2 %vm169_vm2, %v326_v46  ;;  %322 = vmatmul.msk.bf16.vlgmr.msra.gmra.mxu3 %vm169_vm2, %v326_v46 }
  0x86   :  { %82 = vst.msk [vmem:[#allocation2 + $0xc] sm:$0xf] %vm78_vm1, %v61_v48  ;;  %316 = vmatmul.msk.bf16.vlgmr.msra.gmra.mxu0 %vm169_vm2, %v324_v49  ;;  %320 = vmatmul.msk.bf16.vlgmr.msra.gmra.mxu1 %vm169_vm2, %v324_v49 }
  0x8d   :  { %v325_v50 = vld [vmem:[#allocation2 + $0x8] sm:$0xff] }
  0x95   :  { %319 = vmatmul.msk.bf16.gmra.mxu2 %vm169_vm2, %v327_v51  ;;  %323 = vmatmul.msk.bf16.gmra.mxu3 %vm169_vm2, %v327_v51 }
  0x96   :  { %317 = vmatmul.msk.bf16.gmra.mxu0 %vm169_vm2, %v325_v50  ;;  %321 = vmatmul.msk.bf16.gmra.mxu1 %vm169_vm2, %v325_v50 }
 0x103   :  { %v191_v55 = vpop.f32.mrf.mxu0  ;;  %v220_v56 = vpop.f32.mrf.mxu1 }
 0x104   :  { %v192_v57 = vadd.f32 %v191_v55, %v105_v53  ;;  %v221_v58 = vadd.f32 %v220_v56, %v106_v54 }
 0x106   :  { %v240_v59 = vpack.c.bf16 %v221_v58, %v192_v57 }
 0x108   :  { %248 = vst [vmem:[%s522_s4] sm:$0xff] %v240_v59  ;;  %v201_v60 = vpop.f32.mrf.mxu2  ;;  %v230_v61 = vpop.f32.mrf.mxu3 }
 0x109   :  { %v202_v62 = vadd.f32 %v201_v60, %v105_v53  ;;  %v231_v63 = vadd.f32 %v230_v61, %v106_v54 }
 0x10b   :  { %v244_v0 = vpack.c.bf16 %v231_v63, %v202_v62  ;;  %v193_v1 = vpop.f32.mrf.mxu0  ;;  %v222_v2 = vpop.f32.mrf.mxu1 }
 0x10c   :  { %v194_v3 = vadd.f32 %v193_v1, %v105_v53  ;;  %v223_v4 = vadd.f32 %v222_v2, %v106_v54 }
 0x10d   :  { %252 = vst [vmem:[%s522_s4 + $0x20] sm:$0xff] %v244_v0 }
 0x10e   :  { %v241_v5 = vpack.c.bf16 %v223_v4, %v194_v3 }
 0x110   :  { %249 = vst [vmem:[%s522_s4 + $0x8] sm:$0xff] %v241_v5  ;;  %v203_v6 = vpop.f32.mrf.mxu2  ;;  %v232_v7 = vpop.f32.mrf.mxu3 }
 0x111   :  { %v204_v8 = vadd.f32 %v203_v6, %v105_v53  ;;  %v233_v9 = vadd.f32 %v232_v7, %v106_v54 }
 0x113   :  { %v245_v10 = vpack.c.bf16 %v233_v9, %v204_v8  ;;  %v196_v11 = vpop.f32.mrf.mxu0  ;;  %v225_v12 = vpop.f32.mrf.mxu1 }
 0x114   :  { %v197_v13 = vadd.f32 %v196_v11, %v105_v53  ;;  %v226_v14 = vadd.f32 %v225_v12, %v106_v54 }
 0x115   :  { %253 = vst [vmem:[%s522_s4 + $0x28] sm:$0xff] %v245_v10 }
 0x116   :  { %v242_v15 = vpack.c.bf16 %v226_v14, %v197_v13 }
 0x118   :  { %250 = vst [vmem:[%s522_s4 + $0x10] sm:$0xff] %v242_v15  ;;  %v206_v16 = vpop.f32.mrf.mxu2  ;;  %v235_v17 = vpop.f32.mrf.mxu3 }
 0x119   :  { %v207_v18 = vadd.f32 %v206_v16, %v105_v53  ;;  %v236_v19 = vadd.f32 %v235_v17, %v106_v54 }
 0x11b   :  { %v246_v20 = vpack.c.bf16 %v236_v19, %v207_v18  ;;  %v198_v21 = vpop.f32.mrf.mxu0  ;;  %v227_v22 = vpop.f32.mrf.mxu1 }
 0x11c   :  { %v199_v23 = vadd.f32 %v198_v21, %v105_v53  ;;  %v228_v24 = vadd.f32 %v227_v22, %v106_v54 }
 0x11d   :  { %254 = vst [vmem:[%s522_s4 + $0x30] sm:$0xff] %v246_v20 }
 0x11e   :  { %v243_v25 = vpack.c.bf16 %v228_v24, %v199_v23 }
 0x120   :  { %251 = vst [vmem:[%s522_s4 + $0x18] sm:$0xff] %v243_v25  ;;  %v208_v26 = vpop.f32.mrf.mxu2  ;;  %v237_v27 = vpop.f32.mrf.mxu3 }
 0x121   :  { %v209_v28 = vadd.f32 %v208_v26, %v105_v53  ;;  %v238_v29 = vadd.f32 %v237_v27, %v106_v54 }
 0x123   :  { %v247_v30 = vpack.c.bf16 %v238_v29, %v209_v28 }
 0x125   :  { %255 = vst [vmem:[%s522_s4 + $0x38] sm:$0xff] %v247_v30 }

// kernel: stacked_brnn_forward.4
= control target key start
LH: loop header
LB: loop body
LE: loop exit
PB: predicated region body
PF: predicated region fallthrough
CT: control target
= control target key end

     0   :  { %vm61_vm0 = vcmask 130048   ;;  %s263_s1 = inlined_call_operand.vmem [shape: bf16[16,256], index: 1, kind: input, shape index: {}]   ;;  %s264_s0 = inlined_call_operand.vmem [shape: bf16[64,16], index: 0, kind: input, shape index: {}]   ;;  %s265_s2 = inlined_call_operand.vmem [shape: f32[1,256], index: 2, kind: input, shape index: {}]   ;;  %s266_s3 = inlined_call_operand.vmem [shape: bf16[64,256], index: 3, kind: output, shape index: {}]  }
   0x1   :  { %v170_v0 = vld [vmem:[%s263_s1] sm:$0xf]  ;;  %v189_v1 = vld [vmem:[%s263_s1 + $0x4] sm:$0xf0]  ;;  %v188_v2 = vld [vmem:[%s263_s1 + $0x4] sm:$0xf] }
   0x2   :  { %v171_v3 = vor.u32 %v189_v1, %v170_v0  ;;  %v172_v4 = vld [vmem:[%s263_s1 + $0x8] sm:$0xf0]  ;;  %v184_v6 = vld [vmem:[%s264_s0] sm:$0xff]  ;;  %v186_v7 = vld [vmem:[%s264_s0 + $0x10] sm:$0xff] }
   0x3   :  { %v175_v5 = vor.u32 %v188_v2, %v172_v4  ;;  %v185_v8 = vld [vmem:[%s264_s0 + $0x8] sm:$0xff]  ;;  %v187_v9 = vld [vmem:[%s264_s0 + $0x18] sm:$0xff]  ;;  %v25_v10 = vld [vmem:[%s265_s2] sm:$0x3] }
   0x4   :  { %81 = vmatpush.bf16.msra.mxu0 %v171_v3  ;;  %190 = vmatpush.bf16.msra.mxu2 %v171_v3  ;;  %v27_v11 = vperm.slane %v25_v10, 0  ;;  %v28_v12 = vperm.slane %v25_v10, 1 }
   0x5   :  { %110 = vmatpush.bf16.msra.mxu1 %v175_v5  ;;  %191 = vmatpush.bf16.msra.mxu3 %v175_v5 }
   0x7   :  { %176 = vmatmul.msk.bf16.vlgmr.msra.gmra.mxu0 %vm61_vm0, %v184_v6  ;;  %178 = vmatmul.msk.bf16.vlgmr.msra.gmra.mxu2 %vm61_vm0, %v186_v7 }
   0x8   :  { %180 = vmatmul.msk.bf16.vlgmr.msra.gmra.mxu1 %vm61_vm0, %v184_v6  ;;  %182 = vmatmul.msk.bf16.vlgmr.msra.gmra.mxu3 %vm61_vm0, %v186_v7 }
  0x17   :  { %177 = vmatmul.msk.bf16.gmra.mxu0 %vm61_vm0, %v185_v8  ;;  %179 = vmatmul.msk.bf16.gmra.mxu2 %vm61_vm0, %v187_v9 }
  0x18   :  { %181 = vmatmul.msk.bf16.gmra.mxu1 %vm61_vm0, %v185_v8  ;;  %183 = vmatmul.msk.bf16.gmra.mxu3 %vm61_vm0, %v187_v9 }
  0x84   :  { %v83_v13 = vpop.f32.mrf.mxu0 }
  0x85   :  { %v84_v14 = vadd.f32 %v83_v13, %v27_v11  ;;  %v112_v15 = vpop.f32.mrf.mxu1 }
  0x86   :  { %v113_v16 = vadd.f32 %v112_v15, %v28_v12 }
  0x88   :  { %v132_v17 = vpack.c.bf16 %v113_v16, %v84_v14 }
  0x8a   :  { %140 = vst [vmem:[%s266_s3] sm:$0xff] %v132_v17  ;;  %v93_v18 = vpop.f32.mrf.mxu2 }
  0x8b   :  { %v94_v19 = vadd.f32 %v93_v18, %v27_v11  ;;  %v122_v20 = vpop.f32.mrf.mxu3 }
  0x8c   :  { %v123_v21 = vadd.f32 %v122_v20, %v28_v12  ;;  %v85_v22 = vpop.f32.mrf.mxu0 }
  0x8d   :  { %v86_v23 = vadd.f32 %v85_v22, %v27_v11  ;;  %v114_v24 = vpop.f32.mrf.mxu1 }
  0x8e   :  { %v136_v25 = vpack.c.bf16 %v123_v21, %v94_v19  ;;  %v115_v26 = vadd.f32 %v114_v24, %v28_v12 }
  0x90   :  { %144 = vst [vmem:[%s266_s3 + $0x20] sm:$0xff] %v136_v25  ;;  %v133_v27 = vpack.c.bf16 %v115_v26, %v86_v23 }
  0x92   :  { %141 = vst [vmem:[%s266_s3 + $0x8] sm:$0xff] %v133_v27  ;;  %v95_v28 = vpop.f32.mrf.mxu2 }
  0x93   :  { %v96_v29 = vadd.f32 %v95_v28, %v27_v11  ;;  %v124_v30 = vpop.f32.mrf.mxu3 }
  0x94   :  { %v125_v31 = vadd.f32 %v124_v30, %v28_v12  ;;  %v88_v32 = vpop.f32.mrf.mxu0 }
  0x95   :  { %v89_v33 = vadd.f32 %v88_v32, %v27_v11  ;;  %v117_v34 = vpop.f32.mrf.mxu1 }
  0x96   :  { %v137_v35 = vpack.c.bf16 %v125_v31, %v96_v29  ;;  %v118_v36 = vadd.f32 %v117_v34, %v28_v12 }
  0x98   :  { %145 = vst [vmem:[%s266_s3 + $0x28] sm:$0xff] %v137_v35  ;;  %v134_v37 = vpack.c.bf16 %v118_v36, %v89_v33 }
  0x9a   :  { %142 = vst [vmem:[%s266_s3 + $0x10] sm:$0xff] %v134_v37  ;;  %v98_v38 = vpop.f32.mrf.mxu2 }
  0x9b   :  { %v99_v39 = vadd.f32 %v98_v38, %v27_v11  ;;  %v127_v40 = vpop.f32.mrf.mxu3 }
  0x9c   :  { %v128_v41 = vadd.f32 %v127_v40, %v28_v12  ;;  %v90_v42 = vpop.f32.mrf.mxu0 }
  0x9d   :  { %v91_v43 = vadd.f32 %v90_v42, %v27_v11  ;;  %v119_v44 = vpop.f32.mrf.mxu1 }
  0x9e   :  { %v138_v45 = vpack.c.bf16 %v128_v41, %v99_v39  ;;  %v120_v46 = vadd.f32 %v119_v44, %v28_v12 }
  0xa0   :  { %146 = vst [vmem:[%s266_s3 + $0x30] sm:$0xff] %v138_v45  ;;  %v135_v47 = vpack.c.bf16 %v120_v46, %v91_v43 }
  0xa2   :  { %143 = vst [vmem:[%s266_s3 + $0x18] sm:$0xff] %v135_v47  ;;  %v100_v48 = vpop.f32.mrf.mxu2 }
  0xa3   :  { %v101_v49 = vadd.f32 %v100_v48, %v27_v11  ;;  %v129_v50 = vpop.f32.mrf.mxu3 }
  0xa4   :  { %v130_v51 = vadd.f32 %v129_v50, %v28_v12 }
  0xa6   :  { %v139_v52 = vpack.c.bf16 %v130_v51, %v101_v49 }
  0xa8   :  { %147 = vst [vmem:[%s266_s3 + $0x38] sm:$0xff] %v139_v52 }

// kernel: stacked_brnn_forward.5
= control target key start
LH: loop header
LB: loop body
LE: loop exit
PB: predicated region body
PF: predicated region fallthrough
CT: control target
= control target key end

     0   :  { %s1384_s9 = smov 0   ;;  %s1386_s10 = smov 0   ;;  %s1680_s0 = inlined_call_operand.vmem [shape: bf16[8,8,256], index: 0, kind: input, shape index: {}]   ;;  %s1681_s1 = inlined_call_operand.vmem [shape: bf16[2,32,128], index: 1, kind: input, shape index: {}]   ;;  %s1682_s2 = inlined_call_operand.vmem [shape: bf16[2,8,8,32], index: 2, kind: output, shape index: {}]  }
   0x1   :  { %s1388_s11 = smov 0   ;;  %s1390_s12 = smov 0  }
   0x2   :  { %s1392_s13 = smov 0  }
   0x3 LB: > { %s24_s14 = sadd.s32 1, %s1359_s12  ;;  %p48_p1 = scmp.ne.s32.totalorder %s1351_s10, %s1347_s9  ;;  %s1363_s13 = sphi %s1392_s13, %s12_s13   ;;  %s1359_s12 = sphi %s1390_s12, %s1696_s12   ;;  %s1355_s11 = sphi %s1388_s11, %s1695_s11   ;;  %s1351_s10 = sphi %s1386_s10, %s1694_s10   ;;  %s1347_s9 = sphi %s1384_s9, %s1693_s9  }
   0x4   : > { %p26_p0 = scmp.ge.s32.totalorder %s24_s14, 2  ;;  %p49_p2 = scmp.eq.s32.totalorder %s1363_s13, 0 }
   0x5   : > { %s41_s16 = sadd.s32 1, %s1351_s10  ;;  %p1148_p5 = scmp.ge.s32.totalorder %s1363_s13, 2 }
   0x6   : > { %s1698_s14 = smov (%p26_p0, %s24_s14), 0  ;;  %p50_p3 = por %p49_p2, %p48_p1 }
   0x7   : > { %s37_s15 = ssub.s32 %s1359_s12, %s1698_s14  ;;  %136 = sbr.rel (%p1148_p5) target bundleno = 24 (0x18), region = 16 }
   0x8   : > { %p39_p4 = scmp.eq.s32.totalorder %s37_s15, 0 }
   0xa   : > { %s1419_s17 = scalar_select %p39_p4, %s1351_s10, %s41_s16  }
   0xc   : > { %139 = sbr.rel (!%p50_p3) target bundleno = 24 (0x18), region = 20  ;;  %s141_s18 = sand.u32 (%p50_p3), 1, %s1351_s10  }
   0xd   : > { %s1150_s19 = sshll.u32 (%p50_p3), %s1359_s12, 2  ;;  %s1149_s20 = sshll.u32 (%p50_p3), %s141_s18, 5 }
   0xe   : > { %s152_s23 = scalar_lea.vmem (%p50_p3), %s1680_s0, %s1150_s19  ;;  %s143_s24 = scalar_lea.vmem (%p50_p3), [#allocation4], %s1149_s20 }
   0xf   : > { %v169_v0 = vld [vmem:[%s152_s23] sm:$0xf] (%p50_p3)  ;;  %v171_v1 = vld [vmem:[%s152_s23 + $0x8] sm:$0xf] (%p50_p3)  ;;  %v173_v2 = vld [vmem:[%s152_s23 + $0x10] sm:$0xf] (%p50_p3) }
  0x10   : > { %170 = vst [vmem:[%s143_s24] sm:$0xf] (%p50_p3), %v169_v0  ;;  %v175_v3 = vld [vmem:[%s152_s23 + $0x18] sm:$0xf] (%p50_p3)  ;;  %v177_v4 = vld [vmem:[%s152_s23 + $0x20] sm:$0xf] (%p50_p3) }
  0x11   : > { %172 = vst [vmem:[%s143_s24 + $0x4] sm:$0xf] %v171_v1  ;;  %v179_v5 = vld [vmem:[%s152_s23 + $0x28] sm:$0xf]  ;;  %v181_v6 = vld [vmem:[%s152_s23 + $0x30] sm:$0xf] }
  0x12   : > { %174 = vst [vmem:[%s143_s24 + $0x8] sm:$0xf] %v173_v2  ;;  %v183_v7 = vld [vmem:[%s152_s23 + $0x38] sm:$0xf] }
  0x13   : > { %176 = vst [vmem:[%s143_s24 + $0xc] sm:$0xf] %v175_v3 }
  0x14   : > { %178 = vst [vmem:[%s143_s24 + $0x10] sm:$0xf] %v177_v4 }
  0x15   : > { %180 = vst [vmem:[%s143_s24 + $0x14] sm:$0xf] %v179_v5 }
  0x16   : > { %182 = vst [vmem:[%s143_s24 + $0x18] sm:$0xf] %v181_v6 }
  0x17   : > { %184 = vst [vmem:[%s143_s24 + $0x1c] sm:$0xf] %v183_v7 }
  0x18 PF: > { %p1151_p6 = scmp.ge.s32.totalorder %s1363_s13, 1  ;;  %p231_p7 = scmp.lt.s32.totalorder %s1363_s13, 3 }
  0x1a   : > { %p232_p8 = pnand %p1151_p6, %p231_p7 }
  0x1b   : > { %p277_p9 = scmp.lt.s32.totalorder (!%p232_p8), %s1355_s11, 1  ;;  %s238_s30 = sand.u32 (!%p232_p8), 1, %s1347_s9  }
  0x1c   : > { %235 = sbr.rel (%p232_p8) target bundleno = 4717 (0x126d), region = 65  ;;  %s1152_s3 = sshll.u32 (!%p232_p8), %s238_s30, 5 }
  0x1d   : > { %s1215_s4 = smul.u32 (!%p232_p8), 28, %s1355_s11  ;;  %s1442_s5 = scalar_lea.vmem (!%p232_p8), [#allocation4], %s1152_s3 }
  0x1e   : > { %s1366_s7 = smov (!%p232_p8), 64   ;;  %s1367_s8 = smov (!%p232_p8), 32  }
  0x1f   : > { %s323_s6 = scalar_lea.vmem (!%p232_p8), %s1442_s5, %s1215_s4 [#allocation4]  ;;  %s1368_s9 = smov (!%p232_p8), 96  }
  0x20   : > { %s319_s15 = smul.u32 (!%p232_p8), 7, %s1355_s11  ;;  %s574_s3 = sadd.s32 (!%p232_p8), 3, %s1355_s11 }
  0x21   : > { %vm305_vm0 = vcmask 261120   ;;  %v1365_v8 = vmov 0.0   ;;  %s1432_s25 = scalar_select %p277_p9, %s1355_s11, 1  ;;  %v324_v13 = vld [vmem:[%s323_s6] sm:$0xf] }
  0x22   : > { %306 = vst.msk [vmem:[#allocation2] sm:$0xff] %vm305_vm0, %v1365_v8  ;;  %v325_v14 = vunpack.c.l.bf16 %v324_v13  ;;  %p321_p10 = scmp.lt.s32.totalorder %s319_s15, 8  ;;  %s1169_s18 = smul.u32 20, %s1355_s11 }
  0x23   : > { %307 = vst.msk [vmem:[#allocation3] sm:$0xff] %vm305_vm0, %v1365_v8  ;;  %s1211_s26 = sshll.u32 %s1432_s25, 4  ;;  %s416_s20 = smul.u32 5, %s1355_s11 }
  0x24   : > { %s281_s29 = scalar_lea.vmem %s1681_s1, %s1211_s26  ;;  %s1050_s19 = scalar_lea.vmem %s1442_s5, %s1169_s18 [#allocation4] }
  0x25   : > { %v1214_v9 = vld [vmem:[%s281_s29 + $0x8] sm:$0xff]  ;;  %v1213_v10 = vld [vmem:[%s281_s29] sm:$0xff]  ;;  %s407_s16 = scalar_select %p321_p10, 1, 0 }
  0x26   : > { %349 = vmatpush.bf16.msra.mxu0 %v1214_v9  ;;  %437 = vmatpush.bf16.msra.mxu1 %v1214_v9  ;;  %v1170_v47 = vld [vmem:[%s1050_s19 + $0x4] sm:$0xf]  ;;  %s417_s21 = sadd.s32 1, %s416_s20  ;;  %s1175_s23 = smul.u32 12, %s1355_s11 }
  0x27   : > { %516 = vmatpush.bf16.msra.mxu2 %v1214_v9  ;;  %594 = vmatpush.bf16.msra.mxu3 %v1214_v9  ;;  %v408_v40 = vstv %s407_s16  ;;  %v423_v48 = vunpack.c.l.bf16 %v1170_v47  ;;  %p419_p11 = scmp.lt.s32.totalorder %s417_s21, 8  ;;  %s495_s26 = smul.u32 3, %s1355_s11 }
  0x28   : > { %vm409_vm5 = vcmp.eq.s32.totalorder %v408_v40, 1  ;;  %s1058_s24 = scalar_lea.vmem %s1442_s5, %s1175_s23 [#allocation4]  ;;  %s1181_s29 = sshll.u32 %s1355_s11, 2 }
  0x29   : > { %v317_v11 = vld [vmem:[#allocation2] sm:$0xff]  ;;  %s490_s22 = scalar_select %p419_p11, 1, 0 }
  0x2a   : > { %v326_v12 = vpack.c.bf16 %v317_v11, %v317_v11  ;;  %350 = vmatpush.bf16.msra.mxu0 %v1213_v10  ;;  %438 = vmatpush.bf16.msra.mxu1 %v1213_v10  ;;  %v318_v19 = vld [vmem:[#allocation3] sm:$0xff]  ;;  %s496_s27 = sadd.s32 2, %s495_s26  ;;  %s1065_s30 = scalar_lea.vmem %s1442_s5, %s1181_s29 [#allocation4] }
  0x2b   : > { %517 = vmatpush.bf16.msra.mxu2 %v1213_v10  ;;  %595 = vmatpush.bf16.msra.mxu3 %v1213_v10  ;;  %p498_p12 = scmp.lt.s32.totalorder %s496_s27, 8  ;;  %p576_p13 = scmp.lt.s32.totalorder %s574_s3, 8 }
  0x2c   : > { %411 = vrot.lane.b32.xlu2 %v317_v11, %s1368_s9  ;;  %s652_s15 = ssub.s32 4, %s1355_s11  ;;  %s1191_s21 = smul.u32 4294967284, %s1355_s11 }
  0x2d   : > { %1166 = vmatmul.msk.bf16.vlgmr.msra.gmra.mxu0 %vm305_vm0, %v326_v12  ;;  %s569_s28 = scalar_select %p498_p12, 1, 0 }
  0x2e   : > { %672 = vmatpush.bf16.msrb.mxu0 %v1214_v9  ;;  %751 = vmatpush.bf16.msrb.mxu1 %v1214_v9  ;;  %s647_s6 = scalar_select %p576_p13, 1, 0 }
  0x2f   : > { %830 = vmatpush.bf16.msrb.mxu2 %v1214_v9  ;;  %909 = vmatpush.bf16.msrb.mxu3 %v1214_v9  ;;  %v491_v9 = vstv %s490_s22  ;;  %s1519_s16 = sshll.u32 %s652_s15, 2  ;;  %p654_p0 = scmp.lt.s32.totalorder %s652_s15, 8 }
  0x30   : > { %vm1470_vm10 = vcmp.eq.s32.totalorder %v491_v9, 1  ;;  %s656_s19 = scalar_lea.vmem %s1442_s5, %s1519_s16 [#allocation4]  ;;  %s1076_s22 = scalar_lea.vmem %s1442_s5, %s1191_s21 [#allocation4] }
  0x31   : > { %s725_s20 = scalar_select %p654_p0, 1, 0 }
  0x32   : > { %673 = vmatpush.bf16.msrb.mxu0 %v1213_v10  ;;  %752 = vmatpush.bf16.msrb.mxu1 %v1213_v10  ;;  %s809_s3 = smul.u32 4294967291, %s1355_s11 }
  0x33   : > { %831 = vmatpush.bf16.msrb.mxu2 %v1213_v10  ;;  %910 = vmatpush.bf16.msrb.mxu3 %v1213_v10 }
  0x86   : > { %v412_v42 = vpop.permute.xlu2 %411 }
  0xaa   : > { %v352_v15 = vpop.f32.mrf.mxu0 }
  0xab   : > { %v356_v16 = vadd.f32 %v352_v15, %v325_v14 }
  0xad   : > { %1261 = vtanh.f32 %v356_v16  ;;  %v1167_v20 = vmul.f32 -1.442695, %v356_v16  ;;  %v1176_v16 = vld [vmem:[%s1058_s24 + $0x8] sm:$0xf]  ;;  %s730_s24 = smul.u32 4294967293, %s1355_s11 }
  0xaf   : > { %1263 = vpow2.f32 %v1167_v20  ;;  %s731_s26 = sadd.s32 5, %s730_s24 }
  0xb0   : > { %p733_p1 = scmp.lt.s32.totalorder %s731_s26, 8 }
  0xb2   : > { %v354_v17 = vpop.f32.mrf.mxu0  ;;  %s804_s27 = scalar_select %p733_p1, 1, 0 }
  0xb3   : > { %v1262_v18 = vpop.eup %1261  ;;  %v502_v17 = vunpack.c.l.bf16 %v1176_v16 }
  0xb4   : > { %383 = vrot.lane.b32.xlu0 %v1262_v18, %s1366_s7 }
  0xb5   : > { %v1264_v21 = vpop.eup %1263 }
  0xb6   : > { %v360_v22 = vadd.f32 1.0, %v1264_v21 }
  0xb8   : > { %1265 = vrcp.f32 %v360_v22  ;;  %v372_v28 = vand.u32 2147483648, %v360_v22  ;;  %vm366_vm2 = vweird.f32 %v360_v22  ;;  %v370_v29 = vand.u32 2147483647, %v360_v22 }
  0xba   : > { %v373_v31 = vor.u32 1.1754944e-38, %v372_v28  ;;  %vm371_vm4 = vcmp.eq.f32.partialorder %v370_v29, 8.507059e+37 }
  0xbc   : > { %378 = vrot.lane.b32.xlu0 %v318_v19, %s1367_s8 }
  0xbe   : > { %v1266_v23 = vpop.eup %1265 }
  0xbf   : > { %v362_v24 = vmul.f32 %v1266_v23, %v360_v22  ;;  %vm367_vm1 = vweird.f32 %v1266_v23 }
  0xc0   : > { %vm368_vm3 = vmor %vm366_vm2, %vm367_vm1 }
  0xc1   : > { %v363_v25 = vsub.f32 1.0, %v362_v24 }
  0xc3   : > { %v364_v26 = vmul.f32 %v1266_v23, %v363_v25 }
  0xc5   : > { %v365_v27 = vadd.f32 %v1266_v23, %v364_v26 }
  0xc7   : > { %v369_v30 = vsel %vm368_vm3, %v1266_v23, %v365_v27 }
  0xc8   : > { %v374_v33 = vsel %vm371_vm4, %v373_v31, %v369_v30 }
 0x126   : > { %v384_v32 = vpop.permute.xlu0 %383 }
 0x127   : > { %v386_v34 = vmul.f32 %v384_v32, %v374_v33 }
 0x129   : > { %388 = vrot.lane.b32.xlu1 %v386_v34, %s1367_s8 }
 0x12e   : > { %v379_v35 = vpop.permute.xlu0 %378 }
 0x12f   : > { %v381_v36 = vmul.f32 %v379_v35, %v374_v33 }
 0x19b   : > { %v389_v37 = vpop.permute.xlu1 %388 }
 0x19c   : > { %v391_v38 = vadd.f32 %v389_v37, %v381_v36 }
 0x19e   : > { %1267 = vtanh.f32 %v391_v38  ;;  %v415_v4 = vsel %vm409_vm5, %v391_v38, %v379_v35 }
 0x1a4   : > { %v1268_v39 = vpop.eup %1267 }
 0x1a5   : > { %394 = vrot.lane.b32.xlu1 %v1268_v39, %s1366_s7 }
 0x217   : > { %v395_v41 = vpop.permute.xlu1 %394 }
 0x218   : > { %v1453_v43 = vmul.f32 %v395_v41, %v374_v33 }
 0x21a   : > { %v414_v44 = vsel %vm409_vm5, %v1453_v43, %v412_v42  ;;  %v570_v42 = vstv %s569_s28  ;;  %s1197_s28 = smul.u32 4294967276, %s1355_s11 }
 0x21b   : > { %v424_v45 = vpack.c.bf16 %v414_v44, %v414_v44  ;;  %vm1491_vm15 = vcmp.eq.s32.totalorder %v570_v42, 1 }
 0x21d   : > { %426 = vrot.lane.b32.xlu2 %v424_v45, %s1367_s8 }
 0x277   : > { %v427_v46 = vpop.permute.xlu2 %426 }
 0x278   : > { %1171 = vmatmul.msk.bf16.vlgmr.msra.gmra.mxu1 %vm305_vm0, %v427_v46 }
 0x2f5   : > { %v440_v49 = vpop.f32.mrf.mxu1 }
 0x2f6   : > { %v444_v50 = vadd.f32 %v440_v49, %v423_v48 }
 0x2f8   : > { %1269 = vtanh.f32 %v444_v50  ;;  %v1172_v53 = vmul.f32 -1.442695, %v444_v50  ;;  %v1182_v50 = vld [vmem:[%s1065_s30 + $0xc] sm:$0xf]  ;;  %s1084_s30 = scalar_lea.vmem %s1442_s5, %s1197_s28 [#allocation4] }
 0x2fa   : > { %1271 = vpow2.f32 %v1172_v53 }
 0x2fd   : > { %v442_v51 = vpop.f32.mrf.mxu1 }
 0x2fe   : > { %v1270_v52 = vpop.eup %1269  ;;  %v580_v51 = vunpack.c.l.bf16 %v1182_v50 }
 0x2ff   : > { %467 = vrot.lane.b32.xlu0 %v1270_v52, %s1366_s7 }
 0x300   : > { %v1272_v54 = vpop.eup %1271 }
 0x301   : > { %v448_v55 = vadd.f32 1.0, %v1272_v54 }
 0x303   : > { %1273 = vrcp.f32 %v448_v55  ;;  %v460_v61 = vand.u32 2147483648, %v448_v55  ;;  %vm454_vm7 = vweird.f32 %v448_v55  ;;  %v458_v62 = vand.u32 2147483647, %v448_v55 }
 0x305   : > { %v461_v0 = vor.u32 1.1754944e-38, %v460_v61  ;;  %vm459_vm9 = vcmp.eq.f32.partialorder %v458_v62, 8.507059e+37 }
 0x309   : > { %v1274_v56 = vpop.eup %1273 }
 0x30a   : > { %v450_v57 = vmul.f32 %v1274_v56, %v448_v55  ;;  %vm455_vm6 = vweird.f32 %v1274_v56 }
 0x30b   : > { %vm456_vm8 = vmor %vm454_vm7, %vm455_vm6 }
 0x30c   : > { %v451_v58 = vsub.f32 1.0, %v450_v57 }
 0x30e   : > { %v452_v59 = vmul.f32 %v1274_v56, %v451_v58 }
 0x310   : > { %v453_v60 = vadd.f32 %v1274_v56, %v452_v59 }
 0x312   : > { %v457_v63 = vsel %vm456_vm8, %v1274_v56, %v453_v60 }
 0x313   : > { %v462_v2 = vsel %vm459_vm9, %v461_v0, %v457_v63 }
 0x314   : > { %v465_v5 = vmul.f32 %v462_v2, %v415_v4 }
 0x371   : > { %v468_v1 = vpop.permute.xlu0 %467 }
 0x372   : > { %v470_v3 = vmul.f32 %v468_v1, %v462_v2 }
 0x374   : > { %472 = vrot.lane.b32.xlu1 %v470_v3, %s1367_s8 }
 0x3e6   : > { %v473_v6 = vpop.permute.xlu1 %472 }
 0x3e7   : > { %v475_v7 = vadd.f32 %v473_v6, %v465_v5 }
 0x3e9   : > { %1275 = vtanh.f32 %v475_v7  ;;  %v494_v37 = vsel %vm1470_vm10, %v475_v7, %v415_v4 }
 0x3ef   : > { %v1276_v8 = vpop.eup %1275 }
 0x3f0   : > { %478 = vrot.lane.b32.xlu2 %v1276_v8, %s1366_s7 }
 0x44a   : > { %v479_v10 = vpop.permute.xlu2 %478 }
 0x44b   : > { %v1468_v11 = vmul.f32 %v479_v10, %v462_v2 }
 0x44d   : > { %v493_v13 = vsel %vm1470_vm10, %v1468_v11, %v414_v44 }
 0x44e   : > { %v503_v14 = vpack.c.bf16 %v493_v13, %v493_v13 }
 0x450   : > { %505 = vrot.lane.b32.xlu0 %v503_v14, %s1367_s8 }
 0x4c2   : > { %v506_v15 = vpop.permute.xlu0 %505 }
 0x4c3   : > { %1177 = vmatmul.msk.bf16.vlgmr.msra.gmra.mxu2 %vm305_vm0, %v506_v15 }
 0x546   : > { %v519_v18 = vpop.f32.mrf.mxu2 }
 0x547   : > { %v523_v19 = vadd.f32 %v519_v18, %v502_v17 }
 0x549   : > { %1277 = vtanh.f32 %v523_v19  ;;  %v1178_v22 = vmul.f32 -1.442695, %v523_v19  ;;  %v657_v19 = vld [vmem:[%s656_s19] sm:$0xf]  ;;  %s1203_s19 = smul.u32 4294967268, %s1355_s11 }
 0x54b   : > { %1279 = vpow2.f32 %v1178_v22 }
 0x54e   : > { %v521_v20 = vpop.f32.mrf.mxu2 }
 0x54f   : > { %v1278_v21 = vpop.eup %1277  ;;  %v658_v20 = vunpack.c.l.bf16 %v657_v19 }
 0x550   : > { %546 = vrot.lane.b32.xlu1 %v1278_v21, %s1366_s7 }
 0x551   : > { %v1280_v23 = vpop.eup %1279 }
 0x552   : > { %v527_v24 = vadd.f32 1.0, %v1280_v23 }
 0x554   : > { %1281 = vrcp.f32 %v527_v24  ;;  %v539_v30 = vand.u32 2147483648, %v527_v24  ;;  %vm533_vm12 = vweird.f32 %v527_v24  ;;  %v537_v31 = vand.u32 2147483647, %v527_v24 }
 0x556   : > { %v540_v33 = vor.u32 1.1754944e-38, %v539_v30  ;;  %vm538_vm14 = vcmp.eq.f32.partialorder %v537_v31, 8.507059e+37 }
 0x55a   : > { %v1282_v25 = vpop.eup %1281 }
 0x55b   : > { %v529_v26 = vmul.f32 %v1282_v25, %v527_v24  ;;  %vm534_vm11 = vweird.f32 %v1282_v25 }
 0x55c   : > { %vm535_vm13 = vmor %vm533_vm12, %vm534_vm11 }
 0x55d   : > { %v530_v27 = vsub.f32 1.0, %v529_v26 }
 0x55f   : > { %v531_v28 = vmul.f32 %v1282_v25, %v530_v27 }
 0x561   : > { %v532_v29 = vadd.f32 %v1282_v25, %v531_v28 }
 0x563   : > { %v536_v32 = vsel %vm535_vm13, %v1282_v25, %v532_v29 }
 0x564   : > { %v541_v35 = vsel %vm538_vm14, %v540_v33, %v536_v32 }
 0x565   : > { %v544_v38 = vmul.f32 %v541_v35, %v494_v37 }
 0x5c2   : > { %v547_v34 = vpop.permute.xlu1 %546 }
 0x5c3   : > { %v549_v36 = vmul.f32 %v547_v34, %v541_v35 }
 0x5c5   : > { %551 = vrot.lane.b32.xlu2 %v549_v36, %s1367_s8 }
 0x61f   : > { %v552_v39 = vpop.permute.xlu2 %551 }
 0x620   : > { %v554_v40 = vadd.f32 %v552_v39, %v544_v38 }
 0x622   : > { %1283 = vtanh.f32 %v554_v40  ;;  %v573_v7 = vsel %vm1491_vm15, %v554_v40, %v494_v37 }
 0x628   : > { %v1284_v41 = vpop.eup %1283 }
 0x629   : > { %557 = vrot.lane.b32.xlu0 %v1284_v41, %s1366_s7 }
 0x69b   : > { %v558_v44 = vpop.permute.xlu0 %557 }
 0x69c   : > { %v1489_v45 = vmul.f32 %v558_v44, %v541_v35 }
 0x69e   : > { %v572_v47 = vsel %vm1491_vm15, %v1489_v45, %v493_v13  ;;  %v648_v13 = vstv %s647_s6  ;;  %s810_s6 = sadd.s32 6, %s809_s3 }
 0x69f   : > { %v581_v48 = vpack.c.bf16 %v572_v47, %v572_v47  ;;  %vm649_vm5 = vcmp.eq.s32.totalorder %v648_v13, 1  ;;  %p812_p2 = scmp.lt.s32.totalorder %s810_s6, 8 }
 0x6a1   : > { %583 = vrot.lane.b32.xlu1 %v581_v48, %s1367_s8  ;;  %s883_s15 = scalar_select %p812_p2, 1, 0 }
 0x713   : > { %v584_v49 = vpop.permute.xlu1 %583 }
 0x714   : > { %1183 = vmatmul.msk.bf16.vlgmr.msra.gmra.mxu3 %vm305_vm0, %v584_v49 }
 0x797   : > { %v597_v52 = vpop.f32.mrf.mxu3 }
 0x798   : > { %v601_v53 = vadd.f32 %v597_v52, %v580_v51 }
 0x79a   : > { %1285 = vtanh.f32 %v601_v53  ;;  %v1184_v56 = vmul.f32 -1.442695, %v601_v53  ;;  %v1192_v53 = vld [vmem:[%s1076_s22 + $0x14] sm:$0xf] }
 0x79c   : > { %1287 = vpow2.f32 %v1184_v56 }
 0x79f   : > { %v599_v54 = vpop.f32.mrf.mxu3 }
 0x7a0   : > { %v1286_v55 = vpop.eup %1285  ;;  %v737_v54 = vunpack.c.l.bf16 %v1192_v53  ;;  %v884_v53 = vstv %s883_s15 }
 0x7a1   : > { %624 = vrot.lane.b32.xlu2 %v1286_v55, %s1366_s7 }
 0x7a2   : > { %v1288_v57 = vpop.eup %1287 }
 0x7a3   : > { %v605_v58 = vadd.f32 1.0, %v1288_v57 }
 0x7a5   : > { %1289 = vrcp.f32 %v605_v58  ;;  %v617_v0 = vand.u32 2147483648, %v605_v58  ;;  %vm611_vm2 = vweird.f32 %v605_v58  ;;  %v615_v1 = vand.u32 2147483647, %v605_v58 }
 0x7a7   : > { %v618_v3 = vor.u32 1.1754944e-38, %v617_v0  ;;  %vm616_vm4 = vcmp.eq.f32.partialorder %v615_v1, 8.507059e+37 }
 0x7ab   : > { %v1290_v59 = vpop.eup %1289 }
 0x7ac   : > { %v607_v60 = vmul.f32 %v1290_v59, %v605_v58  ;;  %vm612_vm1 = vweird.f32 %v1290_v59 }
 0x7ad   : > { %vm613_vm3 = vmor %vm611_vm2, %vm612_vm1 }
 0x7ae   : > { %v608_v61 = vsub.f32 1.0, %v607_v60 }
 0x7b0   : > { %v609_v62 = vmul.f32 %v1290_v59, %v608_v61 }
 0x7b2   : > { %v610_v63 = vadd.f32 %v1290_v59, %v609_v62 }
 0x7b4   : > { %v614_v2 = vsel %vm613_vm3, %v1290_v59, %v610_v63 }
 0x7b5   : > { %v619_v5 = vsel %vm616_vm4, %v618_v3, %v614_v2 }
 0x7b6   : > { %v622_v8 = vmul.f32 %v619_v5, %v573_v7 }
 0x7fb   : > { %v625_v4 = vpop.permute.xlu2 %624 }
 0x7fc   : > { %v627_v6 = vmul.f32 %v625_v4, %v619_v5 }
 0x7fe   : > { %629 = vrot.lane.b32.xlu0 %v627_v6, %s1367_s8 }
 0x870   : > { %v630_v9 = vpop.permute.xlu0 %629 }
 0x871   : > { %v632_v10 = vadd.f32 %v630_v9, %v622_v8 }
 0x873   : > { %1291 = vtanh.f32 %v632_v10  ;;  %v651_v40 = vsel %vm649_vm5, %v632_v10, %v573_v7 }
 0x879   : > { %v1292_v12 = vpop.eup %1291 }
 0x87a   : > { %635 = vrot.lane.b32.xlu1 %v1292_v12, %s1366_s7 }
 0x8ec   : > { %v636_v14 = vpop.permute.xlu1 %635 }
 0x8ed   : > { %v1510_v15 = vmul.f32 %v636_v14, %v619_v5 }
 0x8ef   : > { %v650_v16 = vsel %vm649_vm5, %v1510_v15, %v572_v47  ;;  %v726_v47 = vstv %s725_s20  ;;  %vm1571_vm5 = vcmp.eq.s32.totalorder %v884_v53, 1  ;;  %s1092_s20 = scalar_lea.vmem %s1442_s5, %s1203_s19 [#allocation4]  ;;  %s1212_s5 = sshll.u32 %s1432_s25, 5 }
 0x8f0   : > { %v659_v17 = vpack.c.bf16 %v650_v16, %v650_v16  ;;  %vm727_vm10 = vcmp.eq.s32.totalorder %v726_v47, 1  ;;  %s1599_s26 = scalar_lea.vmem %s1682_s2, %s1212_s5  ;;  %s888_s25 = smul.u32 4294967289, %s1355_s11 }
 0x8f1   : > { %s1054_s3 = scalar_lea.vmem %s1599_s26, %s1169_s18  ;;  %s723_s18 = scalar_lea.vmem %s1599_s26, %s1519_s16 }
 0x8f2   : > { %661 = vrot.lane.b32.xlu2 %v659_v17, %s1367_s8  ;;  %v805_v17 = vstv %s804_s27  ;;  %s404_s27 = scalar_lea.vmem %s1599_s26, %s1215_s4  ;;  %s1080_s6 = scalar_lea.vmem %s1599_s26, %s1191_s21 }
 0x8f3   : > { %vm1546_vm15 = vcmp.eq.s32.totalorder %v805_v17, 1 }
 0x94c   : > { %v662_v18 = vpop.permute.xlu2 %661 }
 0x94d   : > { %1188 = vmatmul.msk.bf16.vlgmr.msrb.gmra.mxu0 %vm305_vm0, %v662_v18 }
 0x9ca   : > { %v675_v21 = vpop.f32.mrf.mxu0 }
 0x9cb   : > { %v679_v22 = vadd.f32 %v675_v21, %v658_v20 }
 0x9cd   : > { %1293 = vtanh.f32 %v679_v22  ;;  %v1189_v25 = vmul.f32 -1.442695, %v679_v22 }
 0x9cf   : > { %1295 = vpow2.f32 %v1189_v25 }
 0x9d2   : > { %v677_v23 = vpop.f32.mrf.mxu0 }
 0x9d3   : > { %v1294_v24 = vpop.eup %1293 }
 0x9d4   : > { %702 = vrot.lane.b32.xlu0 %v1294_v24, %s1366_s7  ;;  %v1198_v24 = vld [vmem:[%s1084_s30 + $0x18] sm:$0xf]  ;;  %s889_s30 = sadd.s32 7, %s888_s25 }
 0x9d5   : > { %v1296_v26 = vpop.eup %1295  ;;  %v816_v25 = vunpack.c.l.bf16 %v1198_v24  ;;  %p891_p3 = scmp.lt.s32.totalorder %s889_s30, 8 }
 0x9d6   : > { %v683_v27 = vadd.f32 1.0, %v1296_v26 }
 0x9d7   : > { %s962_s4 = scalar_select %p891_p3, 1, 0 }
 0x9d8   : > { %1297 = vrcp.f32 %v683_v27  ;;  %v695_v33 = vand.u32 2147483648, %v683_v27  ;;  %vm689_vm7 = vweird.f32 %v683_v27  ;;  %v693_v34 = vand.u32 2147483647, %v683_v27 }
 0x9d9   : > { %v963_v24 = vstv %s962_s4 }
 0x9da   : > { %v696_v36 = vor.u32 1.1754944e-38, %v695_v33  ;;  %vm694_vm9 = vcmp.eq.f32.partialorder %v693_v34, 8.507059e+37 }
 0x9de   : > { %v1298_v28 = vpop.eup %1297 }
 0x9df   : > { %v685_v29 = vmul.f32 %v1298_v28, %v683_v27  ;;  %vm690_vm6 = vweird.f32 %v1298_v28 }
 0x9e0   : > { %vm691_vm8 = vmor %vm689_vm7, %vm690_vm6 }
 0x9e1   : > { %v686_v30 = vsub.f32 1.0, %v685_v29 }
 0x9e3   : > { %v687_v31 = vmul.f32 %v1298_v28, %v686_v30 }
 0x9e5   : > { %v688_v32 = vadd.f32 %v1298_v28, %v687_v31 }
 0x9e7   : > { %v692_v35 = vsel %vm691_vm8, %v1298_v28, %v688_v32 }
 0x9e8   : > { %v697_v38 = vsel %vm694_vm9, %v696_v36, %v692_v35 }
 0x9e9   : > { %v700_v41 = vmul.f32 %v697_v38, %v651_v40 }
 0xa46   : > { %v703_v37 = vpop.permute.xlu0 %702 }
 0xa47   : > { %v705_v39 = vmul.f32 %v703_v37, %v697_v38 }
 0xa49   : > { %707 = vrot.lane.b32.xlu1 %v705_v39, %s1367_s8 }
 0xabb   : > { %v708_v42 = vpop.permute.xlu1 %707 }
 0xabc   : > { %v710_v44 = vadd.f32 %v708_v42, %v700_v41 }
 0xabe   : > { %1299 = vtanh.f32 %v710_v44  ;;  %v729_v10 = vsel %vm727_vm10, %v710_v44, %v651_v40 }
 0xac4   : > { %v1300_v46 = vpop.eup %1299 }
 0xac5   : > { %713 = vrot.lane.b32.xlu2 %v1300_v46, %s1366_s7 }
 0xb1f   : > { %v714_v48 = vpop.permute.xlu2 %713 }
 0xb20   : > { %v1529_v49 = vmul.f32 %v714_v48, %v697_v38 }
 0xb22   : > { %v728_v50 = vsel %vm727_vm10, %v1529_v49, %v650_v16  ;;  %vm405_vm10 = vcmask 257024  }
 0xb23   : > { %v738_v51 = vpack.c.bf16 %v728_v50, %v728_v50 }
 0xb25   : > { %740 = vrot.lane.b32.xlu0 %v738_v51, %s1367_s8 }
 0xb97   : > { %v741_v52 = vpop.permute.xlu0 %740 }
 0xb98   : > { %1193 = vmatmul.msk.bf16.vlgmr.msrb.gmra.mxu1 %vm305_vm0, %v741_v52 }
 0xc15   : > { %v754_v55 = vpop.f32.mrf.mxu1 }
 0xc16   : > { %v758_v56 = vadd.f32 %v754_v55, %v737_v54 }
 0xc18   : > { %1301 = vtanh.f32 %v758_v56  ;;  %v1194_v59 = vmul.f32 -1.442695, %v758_v56 }
 0xc1a   : > { %1303 = vpow2.f32 %v1194_v59 }
 0xc1d   : > { %v756_v57 = vpop.f32.mrf.mxu1 }
 0xc1e   : > { %v1302_v58 = vpop.eup %1301 }
 0xc1f   : > { %781 = vrot.lane.b32.xlu1 %v1302_v58, %s1366_s7 }
 0xc20   : > { %v1304_v60 = vpop.eup %1303 }
 0xc21   : > { %v762_v61 = vadd.f32 1.0, %v1304_v60  ;;  %v1204_v60 = vld [vmem:[%s1092_s20 + $0x1c] sm:$0xf] }
 0xc23   : > { %1305 = vrcp.f32 %v762_v61  ;;  %v774_v3 = vand.u32 2147483648, %v762_v61  ;;  %vm768_vm12 = vweird.f32 %v762_v61  ;;  %v772_v4 = vand.u32 2147483647, %v762_v61 }
 0xc25   : > { %v775_v6 = vor.u32 1.1754944e-38, %v774_v3  ;;  %vm773_vm14 = vcmp.eq.f32.partialorder %v772_v4, 8.507059e+37  ;;  %v639_v3 = vpack.c.bf16 %v1510_v15, %v1510_v15 }
 0xc29   : > { %v1306_v62 = vpop.eup %1305 }
 0xc2a   : > { %v764_v63 = vmul.f32 %v1306_v62, %v762_v61  ;;  %vm769_vm11 = vweird.f32 %v1306_v62  ;;  %v895_v61 = vunpack.c.l.bf16 %v1204_v60 }
 0xc2b   : > { %vm770_vm13 = vmor %vm768_vm12, %vm769_vm11  ;;  %vm1617_vm11 = vcmp.eq.s32.totalorder %v963_v24, 1 }
 0xc2c   : > { %v765_v0 = vsub.f32 1.0, %v764_v63 }
 0xc2e   : > { %v766_v1 = vmul.f32 %v1306_v62, %v765_v0 }
 0xc30   : > { %v767_v2 = vadd.f32 %v1306_v62, %v766_v1 }
 0xc32   : > { %v771_v5 = vsel %vm770_vm13, %v1306_v62, %v767_v2  ;;  %v398_v2 = vpack.c.bf16 %v1453_v43, %v1453_v43 }
 0xc33   : > { %v776_v8 = vsel %vm773_vm14, %v775_v6, %v771_v5 }
 0xc34   : > { %v779_v12 = vmul.f32 %v776_v8, %v729_v10 }
 0xc91   : > { %v782_v7 = vpop.permute.xlu1 %781 }
 0xc92   : > { %v784_v9 = vmul.f32 %v782_v7, %v776_v8 }
 0xc94   : > { %786 = vrot.lane.b32.xlu2 %v784_v9, %s1367_s8 }
 0xcee   : > { %v787_v13 = vpop.permute.xlu2 %786 }
 0xcef   : > { %v789_v14 = vadd.f32 %v787_v13, %v779_v12 }
 0xcf1   : > { %1307 = vtanh.f32 %v789_v14  ;;  %v1563_v47 = vsel %vm1546_vm15, %v789_v14, %v729_v10 }
 0xcf7   : > { %v1308_v16 = vpop.eup %1307 }
 0xcf8   : > { %792 = vrot.lane.b32.xlu0 %v1308_v16, %s1366_s7 }
 0xd6a   : > { %v793_v18 = vpop.permute.xlu0 %792 }
 0xd6b   : > { %v1544_v19 = vmul.f32 %v793_v18, %v776_v8 }
 0xd6d   : > { %v807_v21 = vsel %vm1546_vm15, %v1544_v19, %v728_v50 }
 0xd6e   : > { %v817_v22 = vpack.c.bf16 %v807_v21, %v807_v21 }
 0xd70   : > { %819 = vrot.lane.b32.xlu1 %v817_v22, %s1367_s8  ;;  %v482_v22 = vpack.c.bf16 %v1468_v11, %v1468_v11 }
 0xde2   : > { %v820_v23 = vpop.permute.xlu1 %819 }
 0xde3   : > { %1199 = vmatmul.msk.bf16.vlgmr.msrb.gmra.mxu2 %vm305_vm0, %v820_v23  ;;  %v717_v23 = vpack.c.bf16 %v1529_v49, %v1529_v49 }
 0xe66   : > { %v833_v26 = vpop.f32.mrf.mxu2 }
 0xe67   : > { %v837_v27 = vadd.f32 %v833_v26, %v816_v25 }
 0xe69   : > { %1309 = vtanh.f32 %v837_v27  ;;  %v1200_v30 = vmul.f32 -1.442695, %v837_v27 }
 0xe6b   : > { %1311 = vpow2.f32 %v1200_v30 }
 0xe6e   : > { %v835_v28 = vpop.f32.mrf.mxu2 }
 0xe6f   : > { %v1310_v29 = vpop.eup %1309 }
 0xe70   : > { %860 = vrot.lane.b32.xlu2 %v1310_v29, %s1366_s7 }
 0xe71   : > { %v1312_v31 = vpop.eup %1311 }
 0xe72   : > { %v841_v32 = vadd.f32 1.0, %v1312_v31  ;;  %v561_v31 = vpack.c.bf16 %v1489_v45, %v1489_v45 }
 0xe74   : > { %1313 = vrcp.f32 %v841_v32  ;;  %v853_v38 = vand.u32 2147483648, %v841_v32  ;;  %vm847_vm2 = vweird.f32 %v841_v32  ;;  %v851_v39 = vand.u32 2147483647, %v841_v32 }
 0xe76   : > { %v854_v41 = vor.u32 1.1754944e-38, %v853_v38  ;;  %vm852_vm4 = vcmp.eq.f32.partialorder %v851_v39, 8.507059e+37 }
 0xe7a   : > { %v1314_v33 = vpop.eup %1313 }
 0xe7b   : > { %v843_v34 = vmul.f32 %v1314_v33, %v841_v32  ;;  %vm848_vm1 = vweird.f32 %v1314_v33  ;;  %v796_v32 = vpack.c.bf16 %v1544_v19, %v1544_v19 }
 0xe7c   : > { %vm849_vm3 = vmor %vm847_vm2, %vm848_vm1 }
 0xe7d   : > { %v844_v35 = vsub.f32 1.0, %v843_v34 }
 0xe7f   : > { %v845_v36 = vmul.f32 %v1314_v33, %v844_v35 }
 0xe81   : > { %v846_v37 = vadd.f32 %v1314_v33, %v845_v36 }
 0xe83   : > { %v850_v40 = vsel %vm849_vm3, %v1314_v33, %v846_v37 }
 0xe84   : > { %v855_v44 = vsel %vm852_vm4, %v854_v41, %v850_v40 }
 0xe85   : > { %v858_v48 = vmul.f32 %v855_v44, %v1563_v47 }
 0xeca   : > { %v861_v42 = vpop.permute.xlu2 %860 }
 0xecb   : > { %v863_v46 = vmul.f32 %v861_v42, %v855_v44 }
 0xecd   : > { %865 = vrot.lane.b32.xlu0 %v863_v46, %s1367_s8 }
 0xf3f   : > { %v866_v50 = vpop.permute.xlu0 %865 }
 0xf40   : > { %v1566_v51 = vadd.f32 %v866_v50, %v858_v48 }
 0xf42   : > { %1315 = vtanh.f32 %v1566_v51  ;;  %v887_v11 = vsel %vm1571_vm5, %v1566_v51, %v1563_v47 }
 0xf48   : > { %v1316_v52 = vpop.eup %1315 }
 0xf49   : > { %871 = vrot.lane.b32.xlu1 %v1316_v52, %s1366_s7 }
 0xfbb   : > { %v872_v54 = vpop.permute.xlu1 %871 }
 0xfbc   : > { %v874_v55 = vmul.f32 %v872_v54, %v855_v44 }
 0xfbe   : > { %v1577_v57 = vsel %vm1571_vm5, %v874_v55, %v807_v21  ;;  %v875_v4 = vpack.c.bf16 %v874_v55, %v874_v55 }
 0xfbf   : > { %v896_v58 = vpack.c.bf16 %v1577_v57, %v1577_v57 }
 0xfc1   : > { %898 = vrot.lane.b32.xlu2 %v896_v58, %s1367_s8 }
0x101b   : > { %v899_v59 = vpop.permute.xlu2 %898 }
0x101c   : > { %1205 = vmatmul.msk.bf16.vlgmr.msrb.gmra.mxu3 %vm305_vm0, %v899_v59 }
0x109f   : > { %v912_v62 = vpop.f32.mrf.mxu3 }
0x10a0   : > { %v916_v63 = vadd.f32 %v912_v62, %v895_v61 }
0x10a2   : > { %1317 = vtanh.f32 %v916_v63  ;;  %v1206_v5 = vmul.f32 -1.442695, %v916_v63 }
0x10a4   : > { %1319 = vpow2.f32 %v1206_v5 }
0x10a7   : > { %v914_v0 = vpop.f32.mrf.mxu3 }
0x10a8   : > { %v1318_v1 = vpop.eup %1317 }
0x10a9   : > { %939 = vrot.lane.b32.xlu0 %v1318_v1, %s1366_s7 }
0x10aa   : > { %v1320_v6 = vpop.eup %1319 }
0x10ab   : > { %v920_v7 = vadd.f32 1.0, %v1320_v6 }
0x10ad   : > { %1321 = vrcp.f32 %v920_v7  ;;  %v932_v13 = vand.u32 2147483648, %v920_v7  ;;  %vm926_vm7 = vweird.f32 %v920_v7  ;;  %v930_v15 = vand.u32 2147483647, %v920_v7 }
0x10af   : > { %v933_v16 = vor.u32 1.1754944e-38, %v932_v13  ;;  %vm931_vm9 = vcmp.eq.f32.partialorder %v930_v15, 8.507059e+37 }
0x10b1   : > { %400 = vrot.lane.b32.xlu0 %v398_v2, %s1367_s8 }
0x10b3   : > { %v1322_v8 = vpop.eup %1321 }
0x10b4   : > { %v922_v9 = vmul.f32 %v1322_v8, %v920_v7  ;;  %vm927_vm6 = vweird.f32 %v1322_v8 }
0x10b5   : > { %vm928_vm8 = vmor %vm926_vm7, %vm927_vm6 }
0x10b6   : > { %v923_v10 = vsub.f32 1.0, %v922_v9 }
0x10b8   : > { %v924_v43 = vmul.f32 %v1322_v8, %v923_v10 }
0x10b9   : > { %641 = vrot.lane.b32.xlu0 %v639_v3, %s1367_s8 }
0x10ba   : > { %v925_v12 = vadd.f32 %v1322_v8, %v924_v43 }
0x10bc   : > { %v929_v14 = vsel %vm928_vm8, %v1322_v8, %v925_v12 }
0x10bd   : > { %v934_v18 = vsel %vm931_vm9, %v933_v16, %v929_v14 }
0x10be   : > { %v937_v25 = vmul.f32 %v934_v18, %v887_v11 }
0x10c1   : > { %877 = vrot.lane.b32.xlu0 %v875_v4, %s1367_s8 }
0x111b   : > { %v940_v17 = vpop.permute.xlu0 %939 }
0x111c   : > { %v942_v20 = vmul.f32 %v940_v17, %v934_v18 }
0x111e   : > { %944 = vrot.lane.b32.xlu1 %v942_v20, %s1367_s8 }
0x1123   : > { %v401_v21 = vpop.permute.xlu0 %400 }
0x1124   : > { %406 = vst.msk [vmem:[%s404_s27] sm:$0xf] %vm405_vm10, %v401_v21 }
0x1126   : > { %484 = vrot.lane.b32.xlu1 %v482_v22, %s1367_s8 }
0x112b   : > { %v642_v33 = vpop.permute.xlu0 %641 }
0x112e   : > { %719 = vrot.lane.b32.xlu1 %v717_v23, %s1367_s8 }
0x1133   : > { %v878_v19 = vpop.permute.xlu0 %877 }
0x1190   : > { %v945_v26 = vpop.permute.xlu1 %944 }
0x1191   : > { %v947_v28 = vadd.f32 %v945_v26, %v937_v25 }
0x1193   : > { %1323 = vtanh.f32 %v947_v28  ;;  %v966_v49 = vsel %vm1617_vm11, %v947_v28, %v887_v11 }
0x1194   : > { %973 = vrot.lane.b32.xlu0 %v966_v49, %s1368_s9  ;;  %s1068_s9 = scalar_lea.vmem %s1599_s26, %s1181_s29 }
0x1198   : > { %v485_v29 = vpop.permute.xlu1 %484 }
0x1199   : > { %v1324_v30 = vpop.eup %1323  ;;  %1174 = vst.msk [vmem:[%s1054_s3 + $0x4] sm:$0xf] %vm405_vm10, %v485_v29 }
0x119a   : > { %950 = vrot.lane.b32.xlu2 %v1324_v30, %s1366_s7  ;;  %s1062_s7 = scalar_lea.vmem %s1599_s26, %s1175_s23  ;;  %s1096_s23 = scalar_lea.vmem %s1599_s26, %s1203_s19 }
0x11a0   : > { %v720_v38 = vpop.permute.xlu1 %719 }
0x11a2   : > { %563 = vrot.lane.b32.xlu2 %v561_v31, %s1367_s8 }
0x11aa   : > { %798 = vrot.lane.b32.xlu2 %v796_v32, %s1367_s8 }
0x11f4   : > { %v951_v34 = vpop.permute.xlu2 %950 }
0x11f5   : > { %v953_v35 = vmul.f32 %v951_v34, %v934_v18 }
0x11f7   : > { %v954_v36 = vpack.c.bf16 %v953_v35, %v953_v35  ;;  %v965_v37 = vsel %vm1617_vm11, %v953_v35, %v1577_v57 }
0x11f8   : > { %968 = vrot.lane.b32.xlu2 %v965_v37, %s1367_s8 }
0x11f9   : > { %956 = vrot.lane.b32.xlu1 %v954_v36, %s1367_s8  ;;  %s1088_s8 = scalar_lea.vmem %s1599_s26, %s1197_s28 }
0x11fc   : > { %v564_v45 = vpop.permute.xlu2 %563 }
0x11fd   : > { %1180 = vst.msk [vmem:[%s1062_s7 + $0x8] sm:$0xf] %vm405_vm10, %v564_v45 }
0x11fe   : > { %1186 = vst.msk [vmem:[%s1068_s9 + $0xc] sm:$0xf] %vm405_vm10, %v642_v33 }
0x11ff   : > { %724 = vst.msk [vmem:[%s723_s18] sm:$0xf] %vm405_vm10, %v720_v38 }
0x1204   : > { %v799_v39 = vpop.permute.xlu2 %798 }
0x1205   : > { %1196 = vst.msk [vmem:[%s1080_s6 + $0x14] sm:$0xf] %vm405_vm10, %v799_v39 }
0x1206   : > { %1202 = vst.msk [vmem:[%s1088_s8 + $0x18] sm:$0xf] %vm405_vm10, %v878_v19  ;;  %v974_v40 = vpop.permute.xlu0 %973 }
0x1207   : > { %976 = vst.msk [vmem:[#allocation3] sm:$0xff] %vm305_vm0, %v974_v40 }
0x1252   : > { %v969_v41 = vpop.permute.xlu2 %968 }
0x1253   : > { %971 = vst.msk [vmem:[#allocation2] sm:$0xff] %vm305_vm0, %v969_v41 }
0x126b   : > { %v957_v42 = vpop.permute.xlu1 %956 }
0x126c   : > { %1208 = vst.msk [vmem:[%s1096_s23 + $0x1c] sm:$0xf] %vm405_vm10, %v957_v42 }
0x126d PF: > { %s12_s13 = sadd.s32 1, %s1363_s13   ;;  %s1693_s9 = smov %s1351_s10 }
0x126e   : > { %p9_p4 = scmp.ge.s32.totalorder %s12_s13, 4   ;;  %s1694_s10 = smov %s1419_s17 }
0x126f   : > { %s1695_s11 = smov %s1359_s12  ;;  %s1696_s12 = smov %s1698_s14 }
0x1270   :  { %11 = sbr.rel (!%p9_p4) target bundleno = 3 (0x3), region = 127 }

</bundles_post_ra>
